<compile_context>
chip_gen: v7x
topology: tpu7x:2x2x1
jax: 0.10.0
libtpu: 0.0.40
codegen_flags: <defaults>
</compile_context>

<pallas_src>
import functools

import jax
import jax.numpy as jnp
from jax.experimental import pallas as pl
from jax.experimental.pallas import tpu as pltpu

EPS = 1e-5
LANE = 128


def _round_up(x, m):
  return ((x + m - 1) // m) * m


def _pick_row_tile(ho, wo, max_rows=1024):
  """Largest divisor of ho with tr*wo <= max_rows (mem-bound passes want the
  biggest lane-dense tile that fits VMEM)."""
  best = 1
  for tr in range(1, ho + 1):
    if ho % tr == 0 and tr * wo <= max_rows:
      best = tr
  return best


# ---------------------------------------------------------------------------
# Pass 1: conv1 (as 2x2 s1 conv on space-to-depth input) + fused 1x1 downsample
# ---------------------------------------------------------------------------
def _make_conv1_down_kernel(tr, wo, cp2):
  def kernel(s_ref, w_ref, raw_ref, stats_ref):
    r = pl.program_id(1)
    row0 = pl.multiple_of(r * tr, tr)
    ci = s_ref.shape[3]
    pieces = []
    for dy in range(2):
      # One aligned, full-width slab load per tap row; the dx windows are cut
      # out of the up-cast f32 value (no unaligned sub-word memory ops).
      slab = s_ref[0, pl.ds(row0 + dy, tr), :, :].astype(jnp.float32)
      for dx in range(2):
        pieces.append(slab[:, dx:dx + wo, :])
    # Single K-concatenated MXU matmul; columns [0:Cp] = conv1, [Cp:2Cp] = the
    # fused downsample (weights nonzero only on tap (0,0)'s (odd,odd) phase).
    patch = jnp.concatenate(pieces, axis=-1).reshape(tr * wo, 4 * ci)
    acc = jnp.dot(patch.astype(jnp.bfloat16), w_ref[...],
                  preferred_element_type=jnp.float32)
    raw_ref[...] = acc.reshape(1, tr, wo, cp2).astype(raw_ref.dtype)
    # Packed BN partial stats: row 0 = channel sums, row 1 = sums of squares.
    sums = jnp.sum(acc, axis=0, keepdims=True)
    sq = jnp.sum(acc * acc, axis=0, keepdims=True)
    stats_ref[...] = jnp.concatenate(
        [sums, sq, jnp.zeros((6, cp2), jnp.float32)], axis=0
    ).reshape(1, 1, 8, cp2)

  return kernel


def conv1_down(s, w, ho, wo, tr, cp2):
  n, hi, wi, ci = s.shape
  r = ho // tr
  kernel = _make_conv1_down_kernel(tr, wo, cp2)
  return pl.pallas_call(
      kernel,
      grid=(n, r),
      in_specs=[
          # Whole (s2d'ed, padded) image resident per n; bf16 halves the DMA.
          pl.BlockSpec((1, hi, wi, ci), lambda i, j: (i, 0, 0, 0)),
          pl.BlockSpec((4 * ci, cp2), lambda i, j: (0, 0)),
      ],
      out_specs=(
          pl.BlockSpec((1, tr, wo, cp2), lambda i, j: (i, j, 0, 0)),
          pl.BlockSpec((1, 1, 8, cp2), lambda i, j: (i, j, 0, 0)),
      ),
      out_shape=(
          jax.ShapeDtypeStruct((n, ho, wo, cp2), jnp.bfloat16),
          jax.ShapeDtypeStruct((n, r, 8, cp2), jnp.float32),
      ),
      compiler_params=pltpu.CompilerParams(
          dimension_semantics=("parallel", "parallel")),
  )(s, w)


# ---------------------------------------------------------------------------
# Pass 2: conv2 with bn1 + ReLU + zero halo fused in-kernel (+ bn2 stats)
# ---------------------------------------------------------------------------
def _make_conv2_kernel(tr, ho, wo, cp):
  def kernel(raw1_ref, sc1_ref, sh1_ref, w_ref, raw2_ref, stats_ref, act_scr):
    r = pl.program_id(1)

    @pl.when(r == 0)
    def _():
      # Build bn1(conv1)+ReLU, zero-padded by 1, for the whole image once per
      # n; it stays in VMEM for every row tile (out1 never hits HBM).
      a = jnp.maximum(
          raw1_ref[...].astype(jnp.float32) * sc1_ref[...] + sh1_ref[...], 0.0)
      zr = jnp.zeros((1, 1, wo, cp), jnp.float32)
      a = jnp.concatenate([zr, a, zr], axis=1)          # pad rows
      zc = jnp.zeros((1, ho + 2, 1, cp), jnp.float32)
      a = jnp.concatenate([zc, a, zc], axis=2)          # pad cols
      act_scr[...] = a

    row0 = pl.multiple_of(r * tr, tr)
    pieces = []
    for dy in range(3):
      slab = act_scr[0, pl.ds(row0 + dy, tr), :, :]     # (tr, wo+2, cp) f32
      for dx in range(3):
        pieces.append(slab[:, dx:dx + wo, :])
    patch = jnp.concatenate(pieces, axis=-1).reshape(tr * wo, 9 * cp)
    acc = jnp.dot(patch.astype(jnp.bfloat16), w_ref[...],
                  preferred_element_type=jnp.float32)
    raw2_ref[...] = acc.reshape(1, tr, wo, cp).astype(raw2_ref.dtype)
    sums = jnp.sum(acc, axis=0, keepdims=True)
    sq = jnp.sum(acc * acc, axis=0, keepdims=True)
    stats_ref[...] = jnp.concatenate(
        [sums, sq, jnp.zeros((6, cp), jnp.float32)], axis=0
    ).reshape(1, 1, 8, cp)

  return kernel


def conv2_pass(raw1d, sc1, sh1, w2, ho, wo, tr, cp):
  n = raw1d.shape[0]
  r = ho // tr
  kernel = _make_conv2_kernel(tr, ho, wo, cp)
  return pl.pallas_call(
      kernel,
      grid=(n, r),
      in_specs=[
          # channel-block 0 of the pass-1 output == conv1 columns.
          pl.BlockSpec((1, ho, wo, cp), lambda i, j: (i, 0, 0, 0)),
          pl.BlockSpec((1, cp), lambda i, j: (0, 0)),
          pl.BlockSpec((1, cp), lambda i, j: (0, 0)),
          pl.BlockSpec((9 * cp, cp), lambda i, j: (0, 0)),
      ],
      out_specs=(
          pl.BlockSpec((1, tr, wo, cp), lambda i, j: (i, j, 0, 0)),
          pl.BlockSpec((1, 1, 8, cp), lambda i, j: (i, j, 0, 0)),
      ),
      out_shape=(
          jax.ShapeDtypeStruct((n, ho, wo, cp), jnp.bfloat16),
          jax.ShapeDtypeStruct((n, r, 8, cp), jnp.float32),
      ),
      scratch_shapes=[pltpu.VMEM((1, ho + 2, wo + 2, cp), jnp.float32)],
      compiler_params=pltpu.CompilerParams(
          # The row-tile axis carries the act scratch -> must stay sequential.
          dimension_semantics=("parallel", "arbitrary")),
  )(raw1d, sc1, sh1, w2)


# ---------------------------------------------------------------------------
# Pass 3: bn2 + bn_downsample + residual add + ReLU (pure streaming)
# ---------------------------------------------------------------------------
def _bn_add_relu_kernel(y_ref, z_ref, sy_ref, sz_ref, b_ref, o_ref):
  y = (y_ref[...].astype(jnp.float32) * sy_ref[...]
       + z_ref[...].astype(jnp.float32) * sz_ref[...] + b_ref[...])
  o_ref[...] = jnp.maximum(y, 0.0).astype(o_ref.dtype)


def bn_add_act(raw2, raw1d, s2, sd, shift, tr, out_dtype):
  n, ho, wo, cp = raw2.shape
  r = ho // tr
  tile2 = pl.BlockSpec((1, tr, wo, cp), lambda i, j: (i, j, 0, 0))
  # downsample columns come straight out of raw1d via channel-block index 1.
  tiled = pl.BlockSpec((1, tr, wo, cp), lambda i, j: (i, j, 0, 1))
  vec = pl.BlockSpec((1, cp), lambda i, j: (0, 0))
  return pl.pallas_call(
      _bn_add_relu_kernel,
      grid=(n, r),
      in_specs=[tile2, tiled, vec, vec, vec],
      out_specs=tile2,
      out_shape=jax.ShapeDtypeStruct((n, ho, wo, cp), out_dtype),
      compiler_params=pltpu.CompilerParams(
          dimension_semantics=("parallel", "parallel")),
  )(raw2, raw1d, s2, sd, shift)


# ---------------------------------------------------------------------------
# Glue (pure JAX: O(C) BN folds + single layout-rearrangement passes)
# ---------------------------------------------------------------------------
def _bn_fold(total, total_sq, count, gamma_p, beta_p):
  # TODO(synk): E[x^2]-E[x]^2 in f32 is cancellation-prone for large-mean
  # activations; use a compensated two-pass variance if BN precision matters.
  mean = total / count
  var = jnp.maximum(total_sq / count - mean * mean, 0.0)
  scale = gamma_p * jax.lax.rsqrt(var + EPS)
  shift = beta_p - mean * scale
  return scale.reshape(1, -1), shift.reshape(1, -1)


def _pad_vec(v, cp):
  out = jnp.zeros((cp,), jnp.float32)
  return out.at[: v.shape[0]].set(v.astype(jnp.float32))


def _pad_ch(x, cp):
  c = x.shape[-1]
  if c == cp:
    return x
  return jnp.pad(x, [(0, 0)] * (x.ndim - 1) + [(0, cp - c)])


def _space_to_depth2(x):
  n, h, w, c = x.shape
  x = x.reshape(n, h // 2, 2, w // 2, 2, c)
  x = jnp.transpose(x, (0, 1, 3, 2, 4, 5))
  return x.reshape(n, h // 2, w // 2, 4 * c)


def _conv1_down_weight(w1, wd, cin, cout, ci1_p, c_p):
  """(4*ci1_p, 2*c_p) stacked weights: conv1 (3x3 s2 -> 2x2 s1 on the s2d
  input) in columns [0:c_p]; the fused 1x1 s2 downsample in [c_p:2*c_p]
  (tap (0,0), (odd,odd) channel phase)."""
  w = jnp.zeros((4 * ci1_p, 2 * c_p), jnp.float32)
  for gy in range(2):
    for gx in range(2):
      t = gy * 2 + gx
      for py in range(2):
        for px in range(2):
          dy, dx = 2 * gy + py, 2 * gx + px
          if dy < 3 and dx < 3:
            blk = jnp.transpose(w1[:, :, dy, dx], (1, 0))   # (Cin, Cout)
            r0 = t * ci1_p + (py * 2 + px) * cin
            w = w.at[r0:r0 + cin, :cout].set(blk)
  w = w.at[3 * cin:4 * cin, c_p:c_p + cout].set(
      jnp.transpose(wd[:, :, 0, 0], (1, 0)))
  return w.astype(jnp.bfloat16)


def _conv2_weight(w2, c, c_p):
  w = jnp.zeros((9 * c_p, c_p), jnp.float32)
  for dy in range(3):
    for dx in range(3):
      t = dy * 3 + dx
      w = w.at[t * c_p:t * c_p + c, :c].set(
          jnp.transpose(w2[:, :, dy, dx], (1, 0)))
  return w.astype(jnp.bfloat16)


# ---------------------------------------------------------------------------
# ResidualBlock forward (NCHW in / NCHW out, matching the PyTorch module)
# ---------------------------------------------------------------------------
def residual_block_forward(x_nchw, params, conv1_stride=2):
  if conv1_stride != 2:
    raise NotImplementedError("block config uses conv1/downsample stride 2")
  # TODO(synk): NCHW<->NHWC transpose, zero-pad and space-to-depth remain thin
  # XLA layout-glue passes (one rearrangement each, no heavy compute).
  x = jnp.transpose(x_nchw, (0, 2, 3, 1)).astype(jnp.float32)
  n, h, w, cin = x.shape
  cout = params["w1"].shape[0]
  ho, wo = h // 2, w // 2
  c_p = _round_up(cout, LANE)
  ci1_p = _round_up(4 * cin, LANE)
  tr = _pick_row_tile(ho, wo)
  m = n * ho * wo

  xp = jnp.pad(x, ((0, 0), (1, 1), (1, 1), (0, 0)))
  s = _pad_ch(_space_to_depth2(xp), ci1_p).astype(jnp.bfloat16)

  w1d = _conv1_down_weight(params["w1"], params["wd"], cin, cout, ci1_p, c_p)
  w2 = _conv2_weight(params["w2"], cout, c_p)

  # Pass 1: conv1 + fused downsample (single read of `s`), bf16 raw outputs.
  raw1d, stats1 = conv1_down(s, w1d, ho, wo, tr, 2 * c_p)
  sums1 = jnp.sum(stats1[:, :, 0, :], axis=(0, 1))
  sqs1 = jnp.sum(stats1[:, :, 1, :], axis=(0, 1))
  sc1, sh1 = _bn_fold(sums1[:c_p], sqs1[:c_p], m,
                      _pad_vec(params["g1"], c_p), _pad_vec(params["b1"], c_p))
  scd, shd = _bn_fold(sums1[c_p:], sqs1[c_p:], m,
                      _pad_vec(params["gd"], c_p), _pad_vec(params["bd"], c_p))

  # Pass 2: conv2 with bn1 + ReLU + halo fused in-kernel (out1 never hits HBM).
  raw2, stats2 = conv2_pass(raw1d, sc1, sh1, w2, ho, wo, tr, c_p)
  sums2 = jnp.sum(stats2[:, :, 0, :], axis=(0, 1))
  sqs2 = jnp.sum(stats2[:, :, 1, :], axis=(0, 1))
  sc2, sh2 = _bn_fold(sums2, sqs2, m,
                      _pad_vec(params["g2"], c_p), _pad_vec(params["b2"], c_p))

  # Pass 3: bn2 + bn_downsample + residual add + ReLU.
  out = bn_add_act(raw2, raw1d, sc2, scd, sh2 + shd, tr, jnp.float32)
  out = out[..., :cout]
  return jnp.transpose(out, (0, 3, 1, 2))                        # NCHW


# ---------------------------------------------------------------------------
# Pure-JAX reference (float32, for correctness check)
# ---------------------------------------------------------------------------
def _ref_bn(x_nchw, g, b):
  mean = x_nchw.mean(axis=(0, 2, 3), keepdims=True)
  var = jnp.square(x_nchw - mean).mean(axis=(0, 2, 3), keepdims=True)
  return ((x_nchw - mean) * jax.lax.rsqrt(var + EPS)
          * g.reshape(1, -1, 1, 1) + b.reshape(1, -1, 1, 1))


def residual_block_ref(x, params, conv1_stride=2):
  conv = functools.partial(
      jax.lax.conv_general_dilated,
      dimension_numbers=("NCHW", "OIHW", "NCHW"))
  out = conv(x, params["w1"], (conv1_stride,) * 2, ((1, 1), (1, 1)))
  out = jax.nn.relu(_ref_bn(out, params["g1"], params["b1"]))
  out = conv(out, params["w2"], (1, 1), ((1, 1), (1, 1)))
  out = _ref_bn(out, params["g2"], params["b2"])
  ident = conv(x, params["wd"], (conv1_stride,) * 2, ((0, 0), (0, 0)))
  ident = _ref_bn(ident, params["gd"], params["bd"])
  return jax.nn.relu(out + ident)


# ---------------------------------------------------------------------------
if __name__ == "__main__":
  key = jax.random.PRNGKey(0)
  kx, k1, k2, kd, kg1, kb1, kg2, kb2, kgd, kbd = jax.random.split(key, 10)

  N, Cin, H, W = 2, 4, 16, 16
  Cout = 8
  stride = 2  # conv1 / downsample stride (block's conv2 stride is 1)

  x = jax.random.normal(kx, (N, Cin, H, W), dtype=jnp.float32)

  params = {
      "w1": jax.random.normal(k1, (Cout, Cin, 3, 3), jnp.float32) * 0.2,
      "g1": 1.0 + 0.1 * jax.random.normal(kg1, (Cout,), jnp.float32),
      "b1": 0.1 * jax.random.normal(kb1, (Cout,), jnp.float32),
      "w2": jax.random.normal(k2, (Cout, Cout, 3, 3), jnp.float32) * 0.2,
      "g2": 1.0 + 0.1 * jax.random.normal(kg2, (Cout,), jnp.float32),
      "b2": 0.1 * jax.random.normal(kb2, (Cout,), jnp.float32),
      "wd": jax.random.normal(kd, (Cout, Cin, 1, 1), jnp.float32) * 0.2,
      "gd": 1.0 + 0.1 * jax.random.normal(kgd, (Cout,), jnp.float32),
      "bd": 0.1 * jax.random.normal(kbd, (Cout,), jnp.float32),
  }

  fwd = jax.jit(functools.partial(residual_block_forward, conv1_stride=stride))
  out = jax.block_until_ready(fwd(x, params))

  ref = residual_block_ref(x, params, conv1_stride=stride)
  assert out.shape == (N, Cout, H // stride, W // stride), out.shape
  # bf16 MXU operands + bf16 intermediates (f32 accumulation/statistics)
  # -> bf16-level tolerance vs the f32 reference.
  err = float(jnp.max(jnp.abs(out - ref)))
  assert jnp.allclose(out, ref, rtol=5e-2, atol=5e-2), err

  print("KERNEL_OK")
</pallas_src>

<mosaic_0001>
module attributes {stable_mosaic.version = 11 : i64} {
  func.func @kernel(%arg0: i32, %arg1: i32, %arg2: memref<1x9x9x128xbf16, #tpu.memory_space<vmem>>, %arg3: memref<512x256xbf16, #tpu.memory_space<vmem>>, %arg4: memref<1x8x8x256xbf16, #tpu.memory_space<vmem>>, %arg5: memref<1x1x8x256xf32, #tpu.memory_space<vmem>>) attributes {dimension_semantics = [#tpu.dimension_semantics<parallel>, #tpu.dimension_semantics<parallel>], iteration_bounds = array<i64: 2, 1>, scalar_prefetch = 0 : i64, scratch_operands = 0 : i64, tpu.core_type = #tpu.core_type<tc>, window_params = [{transform_indices = @transform_0, window_bounds = array<i64: 1, 9, 9, 128>}, {pipeline_mode = #tpu.pipeline_mode<synchronous>, transform_indices = @transform_1, window_bounds = array<i64: 512, 256>}, {transform_indices = @transform_2, window_bounds = array<i64: 1, 8, 8, 256>}, {transform_indices = @transform_3, window_bounds = array<i64: 1, 1, 8, 256>}]} {
    %c8_i32 = arith.constant 8 : i32
    %0 = arith.muli %arg1, %c8_i32 : i32
    %1 = tpu.assume_multiple %0, 8 : i32
    %c0_i32 = arith.constant 0 : i32
    %2 = arith.addi %1, %c0_i32 : i32
    %c0 = arith.constant 0 : index
    %3 = arith.index_cast %2 : i32 to index
    %c0_0 = arith.constant 0 : index
    %c0_1 = arith.constant 0 : index
    %4 = vector.load %arg2[%c0, %3, %c0_0, %c0_1] : memref<1x9x9x128xbf16, #tpu.memory_space<vmem>>, vector<1x8x9x128xbf16>
    %5 = vector.shape_cast %4 : vector<1x8x9x128xbf16> to vector<8x9x128xbf16>
    %6 = arith.extf %5 : vector<8x9x128xbf16> to vector<8x9x128xf32>
    %7 = vector.extract_strided_slice %6 {offsets = [0, 0, 0], sizes = [8, 8, 128], strides = [1, 1, 1]} : vector<8x9x128xf32> to vector<8x8x128xf32>
    %8 = vector.extract_strided_slice %6 {offsets = [0, 1, 0], sizes = [8, 8, 128], strides = [1, 1, 1]} : vector<8x9x128xf32> to vector<8x8x128xf32>
    %c1_i32 = arith.constant 1 : i32
    %9 = arith.addi %1, %c1_i32 : i32
    %c0_2 = arith.constant 0 : index
    %10 = arith.index_cast %9 : i32 to index
    %c0_3 = arith.constant 0 : index
    %c0_4 = arith.constant 0 : index
    %11 = vector.load %arg2[%c0_2, %10, %c0_3, %c0_4] : memref<1x9x9x128xbf16, #tpu.memory_space<vmem>>, vector<1x8x9x128xbf16>
    %12 = vector.shape_cast %11 : vector<1x8x9x128xbf16> to vector<8x9x128xbf16>
    %13 = arith.extf %12 : vector<8x9x128xbf16> to vector<8x9x128xf32>
    %14 = vector.extract_strided_slice %13 {offsets = [0, 0, 0], sizes = [8, 8, 128], strides = [1, 1, 1]} : vector<8x9x128xf32> to vector<8x8x128xf32>
    %15 = vector.extract_strided_slice %13 {offsets = [0, 1, 0], sizes = [8, 8, 128], strides = [1, 1, 1]} : vector<8x9x128xf32> to vector<8x8x128xf32>
    %16 = tpu.concatenate %7, %8, %14, %15 in 2 : vector<8x8x128xf32>, vector<8x8x128xf32>, vector<8x8x128xf32>, vector<8x8x128xf32> -> vector<8x8x512xf32>
    %17 = vector.shape_cast %16 : vector<8x8x512xf32> to vector<64x512xf32>
    %18 = arith.truncf %17 : vector<64x512xf32> to vector<64x512xbf16>
    %c0_5 = arith.constant 0 : index
    %c0_6 = arith.constant 0 : index
    %19 = vector.load %arg3[%c0_5, %c0_6] : memref<512x256xbf16, #tpu.memory_space<vmem>>, vector<512x256xbf16>
    %cst = arith.constant dense<0.000000e+00> : vector<64x256xf32>
    %20 = tpu.matmul %18, %19, %cst {dimension_numbers = #tpu.dot_dimension_numbers<[1], [0], [0], [1], [0, 0, 1, 1], [], []>} : vector<64x512xbf16>, vector<512x256xbf16>, vector<64x256xf32> -> vector<64x256xf32>
    %21 = vector.shape_cast %20 : vector<64x256xf32> to vector<1x8x8x256xf32>
    %22 = arith.truncf %21 : vector<1x8x8x256xf32> to vector<1x8x8x256xbf16>
    %c0_7 = arith.constant 0 : index
    %c0_8 = arith.constant 0 : index
    %c0_9 = arith.constant 0 : index
    %c0_10 = arith.constant 0 : index
    %23 = vector.load %arg4[%c0_7, %c0_8, %c0_9, %c0_10] : memref<1x8x8x256xbf16, #tpu.memory_space<vmem>>, vector<1x8x8x256xbf16>
    tpu.vector_store %arg4[%c0_7, %c0_8, %c0_9, %c0_10], %22 {strides = array<i32>} : memref<1x8x8x256xbf16, #tpu.memory_space<vmem>>, vector<1x8x8x256xbf16>,
    %cst_11 = arith.constant dense<0.000000e+00> : vector<256xf32>
    %24 = vector.multi_reduction <add>, %20, %cst_11 [0] : vector<64x256xf32> to vector<256xf32>
    %25 = vector.shape_cast %24 : vector<256xf32> to vector<1x256xf32>
    %26 = arith.mulf %20, %20 : vector<64x256xf32>
    %cst_12 = arith.constant dense<0.000000e+00> : vector<256xf32>
    %27 = vector.multi_reduction <add>, %26, %cst_12 [0] : vector<64x256xf32> to vector<256xf32>
    %28 = vector.shape_cast %27 : vector<256xf32> to vector<1x256xf32>
    %cst_13 = arith.constant 0.000000e+00 : f32
    %29 = vector.broadcast %cst_13 : f32 to vector<6x256xf32>
    %30 = tpu.concatenate %25, %28, %29 in 0 : vector<1x256xf32>, vector<1x256xf32>, vector<6x256xf32> -> vector<8x256xf32>
    %31 = vector.shape_cast %30 : vector<8x256xf32> to vector<1x1x8x256xf32>
    %c0_14 = arith.constant 0 : index
    %c0_15 = arith.constant 0 : index
    %c0_16 = arith.constant 0 : index
    %c0_17 = arith.constant 0 : index
    %32 = vector.load %arg5[%c0_14, %c0_15, %c0_16, %c0_17] : memref<1x1x8x256xf32, #tpu.memory_space<vmem>>, vector<1x1x8x256xf32>
    tpu.vector_store %arg5[%c0_14, %c0_15, %c0_16, %c0_17], %31 {strides = array<i32>} : memref<1x1x8x256xf32, #tpu.memory_space<vmem>>, vector<1x1x8x256xf32>,
    return
  }
  func.func @transform_0(%arg0: i32, %arg1: i32) -> (i32, i32, i32, i32) {
    %c0_i32 = arith.constant 0 : i32
    %c0_i32_0 = arith.constant 0 : i32
    %c0_i32_1 = arith.constant 0 : i32
    %c0_i32_2 = arith.constant 0 : i32
    return %arg0, %c0_i32, %c0_i32_0, %c0_i32_1 : i32, i32, i32, i32
  }
  func.func @transform_1(%arg0: i32, %arg1: i32) -> (i32, i32) {
    %c0_i32 = arith.constant 0 : i32
    %c0_i32_0 = arith.constant 0 : i32
    %c0_i32_1 = arith.constant 0 : i32
    return %c0_i32, %c0_i32_0 : i32, i32
  }
  func.func @transform_2(%arg0: i32, %arg1: i32) -> (i32, i32, i32, i32) {
    %c0_i32 = arith.constant 0 : i32
    %c0_i32_0 = arith.constant 0 : i32
    %c0_i32_1 = arith.constant 0 : i32
    return %arg0, %arg1, %c0_i32, %c0_i32_0 : i32, i32, i32, i32
  }
  func.func @transform_3(%arg0: i32, %arg1: i32) -> (i32, i32, i32, i32) {
    %c0_i32 = arith.constant 0 : i32
    %c0_i32_0 = arith.constant 0 : i32
    %c0_i32_1 = arith.constant 0 : i32
    return %arg0, %arg1, %c0_i32, %c0_i32_0 : i32, i32, i32, i32
  }
}

module attributes {stable_mosaic.version = 11 : i64} {
  func.func @kernel(%arg0: i32, %arg1: i32, %arg2: memref<1x8x8x128xbf16, #tpu.memory_space<vmem>>, %arg3: memref<1x128xf32, #tpu.memory_space<vmem>>, %arg4: memref<1x128xf32, #tpu.memory_space<vmem>>, %arg5: memref<1152x128xbf16, #tpu.memory_space<vmem>>, %arg6: memref<1x8x8x128xbf16, #tpu.memory_space<vmem>>, %arg7: memref<1x1x8x128xf32, #tpu.memory_space<vmem>>, %arg8: memref<1x10x10x128xf32, #tpu.memory_space<vmem>>) attributes {dimension_semantics = [#tpu.dimension_semantics<parallel>, #tpu.dimension_semantics<arbitrary>], iteration_bounds = array<i64: 2, 1>, scalar_prefetch = 0 : i64, scratch_operands = 1 : i64, tpu.core_type = #tpu.core_type<tc>, window_params = [{transform_indices = @transform_0, window_bounds = array<i64: 1, 8, 8, 128>}, {pipeline_mode = #tpu.pipeline_mode<synchronous>, transform_indices = @transform_1, window_bounds = array<i64: 1, 128>}, {pipeline_mode = #tpu.pipeline_mode<synchronous>, transform_indices = @transform_2, window_bounds = array<i64: 1, 128>}, {pipeline_mode = #tpu.pipeline_mode<synchronous>, transform_indices = @transform_3, window_bounds = array<i64: 1152, 128>}, {transform_indices = @transform_4, window_bounds = array<i64: 1, 8, 8, 128>}, {transform_indices = @transform_5, window_bounds = array<i64: 1, 1, 8, 128>}]} {
    %c0_i32 = arith.constant 0 : i32
    %0 = arith.cmpi eq, %arg1, %c0_i32 : i32
    %1 = arith.extui %0 : i1 to i32
    %c0_i32_0 = arith.constant 0 : i32
    %2 = arith.cmpi ne, %1, %c0_i32_0 : i32
    scf.if %2 {
      %c0_23 = arith.constant 0 : index
      %c0_24 = arith.constant 0 : index
      %c0_25 = arith.constant 0 : index
      %c0_26 = arith.constant 0 : index
      %43 = vector.load %arg2[%c0_23, %c0_24, %c0_25, %c0_26] : memref<1x8x8x128xbf16, #tpu.memory_space<vmem>>, vector<1x8x8x128xbf16>
      %44 = arith.extf %43 : vector<1x8x8x128xbf16> to vector<1x8x8x128xf32>
      %c0_27 = arith.constant 0 : index
      %c0_28 = arith.constant 0 : index
      %45 = vector.load %arg3[%c0_27, %c0_28] : memref<1x128xf32, #tpu.memory_space<vmem>>, vector<1x128xf32>
      %46 = vector.shape_cast %45 : vector<1x128xf32> to vector<1x1x1x128xf32>
      %47 = vector.broadcast %46 : vector<1x1x1x128xf32> to vector<1x8x8x128xf32>
      %48 = arith.mulf %44, %47 : vector<1x8x8x128xf32>
      %c0_29 = arith.constant 0 : index
      %c0_30 = arith.constant 0 : index
      %49 = vector.load %arg4[%c0_29, %c0_30] : memref<1x128xf32, #tpu.memory_space<vmem>>, vector<1x128xf32>
      %50 = vector.shape_cast %49 : vector<1x128xf32> to vector<1x1x1x128xf32>
      %51 = vector.broadcast %50 : vector<1x1x1x128xf32> to vector<1x8x8x128xf32>
      %52 = arith.addf %48, %51 : vector<1x8x8x128xf32>
      %cst_31 = arith.constant 0.000000e+00 : f32
      %53 = vector.broadcast %cst_31 : f32 to vector<1x8x8x128xf32>
      %54 = arith.maximumf %52, %53 : vector<1x8x8x128xf32>
      %cst_32 = arith.constant 0.000000e+00 : f32
      %55 = vector.broadcast %cst_32 : f32 to vector<1x1x8x128xf32>
      %56 = tpu.concatenate %55, %54, %55 in 1 : vector<1x1x8x128xf32>, vector<1x8x8x128xf32>, vector<1x1x8x128xf32> -> vector<1x10x8x128xf32>
      %cst_33 = arith.constant 0.000000e+00 : f32
      %57 = vector.broadcast %cst_33 : f32 to vector<1x10x1x128xf32>
      %58 = tpu.concatenate %57, %56, %57 in 2 : vector<1x10x1x128xf32>, vector<1x10x8x128xf32>, vector<1x10x1x128xf32> -> vector<1x10x10x128xf32>
      %c0_34 = arith.constant 0 : index
      %c0_35 = arith.constant 0 : index
      %c0_36 = arith.constant 0 : index
      %c0_37 = arith.constant 0 : index
      %59 = vector.load %arg8[%c0_34, %c0_35, %c0_36, %c0_37] : memref<1x10x10x128xf32, #tpu.memory_space<vmem>>, vector<1x10x10x128xf32>
      tpu.vector_store %arg8[%c0_34, %c0_35, %c0_36, %c0_37], %58 {strides = array<i32>} : memref<1x10x10x128xf32, #tpu.memory_space<vmem>>, vector<1x10x10x128xf32>,
    } else {
    }
    %c8_i32 = arith.constant 8 : i32
    %3 = arith.muli %arg1, %c8_i32 : i32
    %4 = tpu.assume_multiple %3, 8 : i32
    %c0_i32_1 = arith.constant 0 : i32
    %5 = arith.addi %4, %c0_i32_1 : i32
    %c0 = arith.constant 0 : index
    %6 = arith.index_cast %5 : i32 to index
    %c0_2 = arith.constant 0 : index
    %c0_3 = arith.constant 0 : index
    %7 = vector.load %arg8[%c0, %6, %c0_2, %c0_3] : memref<1x10x10x128xf32, #tpu.memory_space<vmem>>, vector<1x8x10x128xf32>
    %8 = vector.shape_cast %7 : vector<1x8x10x128xf32> to vector<8x10x128xf32>
    %9 = vector.extract_strided_slice %8 {offsets = [0, 0, 0], sizes = [8, 8, 128], strides = [1, 1, 1]} : vector<8x10x128xf32> to vector<8x8x128xf32>
    %10 = vector.extract_strided_slice %8 {offsets = [0, 1, 0], sizes = [8, 8, 128], strides = [1, 1, 1]} : vector<8x10x128xf32> to vector<8x8x128xf32>
    %11 = vector.extract_strided_slice %8 {offsets = [0, 2, 0], sizes = [8, 8, 128], strides = [1, 1, 1]} : vector<8x10x128xf32> to vector<8x8x128xf32>
    %c1_i32 = arith.constant 1 : i32
    %12 = arith.addi %4, %c1_i32 : i32
    %c0_4 = arith.constant 0 : index
    %13 = arith.index_cast %12 : i32 to index
    %c0_5 = arith.constant 0 : index
    %c0_6 = arith.constant 0 : index
    %14 = vector.load %arg8[%c0_4, %13, %c0_5, %c0_6] : memref<1x10x10x128xf32, #tpu.memory_space<vmem>>, vector<1x8x10x128xf32>
    %15 = vector.shape_cast %14 : vector<1x8x10x128xf32> to vector<8x10x128xf32>
    %16 = vector.extract_strided_slice %15 {offsets = [0, 0, 0], sizes = [8, 8, 128], strides = [1, 1, 1]} : vector<8x10x128xf32> to vector<8x8x128xf32>
    %17 = vector.extract_strided_slice %15 {offsets = [0, 1, 0], sizes = [8, 8, 128], strides = [1, 1, 1]} : vector<8x10x128xf32> to vector<8x8x128xf32>
    %18 = vector.extract_strided_slice %15 {offsets = [0, 2, 0], sizes = [8, 8, 128], strides = [1, 1, 1]} : vector<8x10x128xf32> to vector<8x8x128xf32>
    %c2_i32 = arith.constant 2 : i32
    %19 = arith.addi %4, %c2_i32 : i32
    %c0_7 = arith.constant 0 : index
    %20 = arith.index_cast %19 : i32 to index
    %c0_8 = arith.constant 0 : index
    %c0_9 = arith.constant 0 : index
    %21 = vector.load %arg8[%c0_7, %20, %c0_8, %c0_9] : memref<1x10x10x128xf32, #tpu.memory_space<vmem>>, vector<1x8x10x128xf32>
    %22 = vector.shape_cast %21 : vector<1x8x10x128xf32> to vector<8x10x128xf32>
    %23 = vector.extract_strided_slice %22 {offsets = [0, 0, 0], sizes = [8, 8, 128], strides = [1, 1, 1]} : vector<8x10x128xf32> to vector<8x8x128xf32>
    %24 = vector.extract_strided_slice %22 {offsets = [0, 1, 0], sizes = [8, 8, 128], strides = [1, 1, 1]} : vector<8x10x128xf32> to vector<8x8x128xf32>
    %25 = vector.extract_strided_slice %22 {offsets = [0, 2, 0], sizes = [8, 8, 128], strides = [1, 1, 1]} : vector<8x10x128xf32> to vector<8x8x128xf32>
    %26 = tpu.concatenate %9, %10, %11, %16, %17, %18, %23, %24, %25 in 2 : vector<8x8x128xf32>, vector<8x8x128xf32>, vector<8x8x128xf32>, vector<8x8x128xf32>, vector<8x8x128xf32>, vector<8x8x128xf32>, vector<8x8x128xf32>, vector<8x8x128xf32>, vector<8x8x128xf32> -> vector<8x8x1152xf32>
    %27 = vector.shape_cast %26 : vector<8x8x1152xf32> to vector<64x1152xf32>
    %28 = arith.truncf %27 : vector<64x1152xf32> to vector<64x1152xbf16>
    %c0_10 = arith.constant 0 : index
    %c0_11 = arith.constant 0 : index
    %29 = vector.load %arg5[%c0_10, %c0_11] : memref<1152x128xbf16, #tpu.memory_space<vmem>>, vector<1152x128xbf16>
    %cst = arith.constant dense<0.000000e+00> : vector<64x128xf32>
    %30 = tpu.matmul %28, %29, %cst {dimension_numbers = #tpu.dot_dimension_numbers<[1], [0], [0], [1], [0, 0, 1, 1], [], []>} : vector<64x1152xbf16>, vector<1152x128xbf16>, vector<64x128xf32> -> vector<64x128xf32>
    %31 = vector.shape_cast %30 : vector<64x128xf32> to vector<1x8x8x128xf32>
    %32 = arith.truncf %31 : vector<1x8x8x128xf32> to vector<1x8x8x128xbf16>
    %c0_12 = arith.constant 0 : index
    %c0_13 = arith.constant 0 : index
    %c0_14 = arith.constant 0 : index
    %c0_15 = arith.constant 0 : index
    %33 = vector.load %arg6[%c0_12, %c0_13, %c0_14, %c0_15] : memref<1x8x8x128xbf16, #tpu.memory_space<vmem>>, vector<1x8x8x128xbf16>
    tpu.vector_store %arg6[%c0_12, %c0_13, %c0_14, %c0_15], %32 {strides = array<i32>} : memref<1x8x8x128xbf16, #tpu.memory_space<vmem>>, vector<1x8x8x128xbf16>,
    %cst_16 = arith.constant dense<0.000000e+00> : vector<128xf32>
    %34 = vector.multi_reduction <add>, %30, %cst_16 [0] : vector<64x128xf32> to vector<128xf32>
    %35 = vector.shape_cast %34 : vector<128xf32> to vector<1x128xf32>
    %36 = arith.mulf %30, %30 : vector<64x128xf32>
    %cst_17 = arith.constant dense<0.000000e+00> : vector<128xf32>
    %37 = vector.multi_reduction <add>, %36, %cst_17 [0] : vector<64x128xf32> to vector<128xf32>
    %38 = vector.shape_cast %37 : vector<128xf32> to vector<1x128xf32>
    %cst_18 = arith.constant 0.000000e+00 : f32
    %39 = vector.broadcast %cst_18 : f32 to vector<6x128xf32>
    %40 = tpu.concatenate %35, %38, %39 in 0 : vector<1x128xf32>, vector<1x128xf32>, vector<6x128xf32> -> vector<8x128xf32>
    %41 = vector.shape_cast %40 : vector<8x128xf32> to vector<1x1x8x128xf32>
    %c0_19 = arith.constant 0 : index
    %c0_20 = arith.constant 0 : index
    %c0_21 = arith.constant 0 : index
    %c0_22 = arith.constant 0 : index
    %42 = vector.load %arg7[%c0_19, %c0_20, %c0_21, %c0_22] : memref<1x1x8x128xf32, #tpu.memory_space<vmem>>, vector<1x1x8x128xf32>
    tpu.vector_store %arg7[%c0_19, %c0_20, %c0_21, %c0_22], %41 {strides = array<i32>} : memref<1x1x8x128xf32, #tpu.memory_space<vmem>>, vector<1x1x8x128xf32>,
    return
  }
  func.func @transform_0(%arg0: i32, %arg1: i32) -> (i32, i32, i32, i32) {
    %c0_i32 = arith.constant 0 : i32
    %c0_i32_0 = arith.constant 0 : i32
    %c0_i32_1 = arith.constant 0 : i32
    %c0_i32_2 = arith.constant 0 : i32
    return %arg0, %c0_i32, %c0_i32_0, %c0_i32_1 : i32, i32, i32, i32
  }
  func.func @transform_1(%arg0: i32, %arg1: i32) -> (i32, i32) {
    %c0_i32 = arith.constant 0 : i32
    %c0_i32_0 = arith.constant 0 : i32
    %c0_i32_1 = arith.constant 0 : i32
    return %c0_i32, %c0_i32_0 : i32, i32
  }
  func.func @transform_2(%arg0: i32, %arg1: i32) -> (i32, i32) {
    %c0_i32 = arith.constant 0 : i32
    %c0_i32_0 = arith.constant 0 : i32
    %c0_i32_1 = arith.constant 0 : i32
    return %c0_i32, %c0_i32_0 : i32, i32
  }
  func.func @transform_3(%arg0: i32, %arg1: i32) -> (i32, i32) {
    %c0_i32 = arith.constant 0 : i32
    %c0_i32_0 = arith.constant 0 : i32
    %c0_i32_1 = arith.constant 0 : i32
    return %c0_i32, %c0_i32_0 : i32, i32
  }
  func.func @transform_4(%arg0: i32, %arg1: i32) -> (i32, i32, i32, i32) {
    %c0_i32 = arith.constant 0 : i32
    %c0_i32_0 = arith.constant 0 : i32
    %c0_i32_1 = arith.constant 0 : i32
    return %arg0, %arg1, %c0_i32, %c0_i32_0 : i32, i32, i32, i32
  }
  func.func @transform_5(%arg0: i32, %arg1: i32) -> (i32, i32, i32, i32) {
    %c0_i32 = arith.constant 0 : i32
    %c0_i32_0 = arith.constant 0 : i32
    %c0_i32_1 = arith.constant 0 : i32
    return %arg0, %arg1, %c0_i32, %c0_i32_0 : i32, i32, i32, i32
  }
}

module attributes {stable_mosaic.version = 11 : i64} {
  func.func @_bn_add_relu_kernel(%arg0: i32, %arg1: i32, %arg2: memref<1x8x8x128xbf16, #tpu.memory_space<vmem>>, %arg3: memref<1x8x8x128xbf16, #tpu.memory_space<vmem>>, %arg4: memref<1x128xf32, #tpu.memory_space<vmem>>, %arg5: memref<1x128xf32, #tpu.memory_space<vmem>>, %arg6: memref<1x128xf32, #tpu.memory_space<vmem>>, %arg7: memref<1x8x8x128xf32, #tpu.memory_space<vmem>>) attributes {dimension_semantics = [#tpu.dimension_semantics<parallel>, #tpu.dimension_semantics<parallel>], iteration_bounds = array<i64: 2, 1>, scalar_prefetch = 0 : i64, scratch_operands = 0 : i64, tpu.core_type = #tpu.core_type<tc>, window_params = [{transform_indices = @transform_0, window_bounds = array<i64: 1, 8, 8, 128>}, {transform_indices = @transform_1, window_bounds = array<i64: 1, 8, 8, 128>}, {pipeline_mode = #tpu.pipeline_mode<synchronous>, transform_indices = @transform_2, window_bounds = array<i64: 1, 128>}, {pipeline_mode = #tpu.pipeline_mode<synchronous>, transform_indices = @transform_3, window_bounds = array<i64: 1, 128>}, {pipeline_mode = #tpu.pipeline_mode<synchronous>, transform_indices = @transform_4, window_bounds = array<i64: 1, 128>}, {transform_indices = @transform_5, window_bounds = array<i64: 1, 8, 8, 128>}]} {
    %c0 = arith.constant 0 : index
    %c0_0 = arith.constant 0 : index
    %c0_1 = arith.constant 0 : index
    %c0_2 = arith.constant 0 : index
    %0 = vector.load %arg2[%c0, %c0_0, %c0_1, %c0_2] : memref<1x8x8x128xbf16, #tpu.memory_space<vmem>>, vector<1x8x8x128xbf16>
    %1 = arith.extf %0 : vector<1x8x8x128xbf16> to vector<1x8x8x128xf32>
    %c0_3 = arith.constant 0 : index
    %c0_4 = arith.constant 0 : index
    %2 = vector.load %arg4[%c0_3, %c0_4] : memref<1x128xf32, #tpu.memory_space<vmem>>, vector<1x128xf32>
    %3 = vector.shape_cast %2 : vector<1x128xf32> to vector<1x1x1x128xf32>
    %4 = vector.broadcast %3 : vector<1x1x1x128xf32> to vector<1x8x8x128xf32>
    %5 = arith.mulf %1, %4 : vector<1x8x8x128xf32>
    %c0_5 = arith.constant 0 : index
    %c0_6 = arith.constant 0 : index
    %c0_7 = arith.constant 0 : index
    %c0_8 = arith.constant 0 : index
    %6 = vector.load %arg3[%c0_5, %c0_6, %c0_7, %c0_8] : memref<1x8x8x128xbf16, #tpu.memory_space<vmem>>, vector<1x8x8x128xbf16>
    %7 = arith.extf %6 : vector<1x8x8x128xbf16> to vector<1x8x8x128xf32>
    %c0_9 = arith.constant 0 : index
    %c0_10 = arith.constant 0 : index
    %8 = vector.load %arg5[%c0_9, %c0_10] : memref<1x128xf32, #tpu.memory_space<vmem>>, vector<1x128xf32>
    %9 = vector.shape_cast %8 : vector<1x128xf32> to vector<1x1x1x128xf32>
    %10 = vector.broadcast %9 : vector<1x1x1x128xf32> to vector<1x8x8x128xf32>
    %11 = arith.mulf %7, %10 : vector<1x8x8x128xf32>
    %12 = arith.addf %5, %11 : vector<1x8x8x128xf32>
    %c0_11 = arith.constant 0 : index
    %c0_12 = arith.constant 0 : index
    %13 = vector.load %arg6[%c0_11, %c0_12] : memref<1x128xf32, #tpu.memory_space<vmem>>, vector<1x128xf32>
    %14 = vector.shape_cast %13 : vector<1x128xf32> to vector<1x1x1x128xf32>
    %15 = vector.broadcast %14 : vector<1x1x1x128xf32> to vector<1x8x8x128xf32>
    %16 = arith.addf %12, %15 : vector<1x8x8x128xf32>
    %cst = arith.constant 0.000000e+00 : f32
    %17 = vector.broadcast %cst : f32 to vector<1x8x8x128xf32>
    %18 = arith.maximumf %16, %17 : vector<1x8x8x128xf32>
    %c0_13 = arith.constant 0 : index
    %c0_14 = arith.constant 0 : index
    %c0_15 = arith.constant 0 : index
    %c0_16 = arith.constant 0 : index
    %19 = vector.load %arg7[%c0_13, %c0_14, %c0_15, %c0_16] : memref<1x8x8x128xf32, #tpu.memory_space<vmem>>, vector<1x8x8x128xf32>
    tpu.vector_store %arg7[%c0_13, %c0_14, %c0_15, %c0_16], %18 {strides = array<i32>} : memref<1x8x8x128xf32, #tpu.memory_space<vmem>>, vector<1x8x8x128xf32>,
    return
  }
  func.func @transform_0(%arg0: i32, %arg1: i32) -> (i32, i32, i32, i32) {
    %c0_i32 = arith.constant 0 : i32
    %c0_i32_0 = arith.constant 0 : i32
    %c0_i32_1 = arith.constant 0 : i32
    return %arg0, %arg1, %c0_i32, %c0_i32_0 : i32, i32, i32, i32
  }
  func.func @transform_1(%arg0: i32, %arg1: i32) -> (i32, i32, i32, i32) {
    %c0_i32 = arith.constant 0 : i32
    %c1_i32 = arith.constant 1 : i32
    %c0_i32_0 = arith.constant 0 : i32
    return %arg0, %arg1, %c0_i32, %c1_i32 : i32, i32, i32, i32
  }
  func.func @transform_2(%arg0: i32, %arg1: i32) -> (i32, i32) {
    %c0_i32 = arith.constant 0 : i32
    %c0_i32_0 = arith.constant 0 : i32
    %c0_i32_1 = arith.constant 0 : i32
    return %c0_i32, %c0_i32_0 : i32, i32
  }
  func.func @transform_3(%arg0: i32, %arg1: i32) -> (i32, i32) {
    %c0_i32 = arith.constant 0 : i32
    %c0_i32_0 = arith.constant 0 : i32
    %c0_i32_1 = arith.constant 0 : i32
    return %c0_i32, %c0_i32_0 : i32, i32
  }
  func.func @transform_4(%arg0: i32, %arg1: i32) -> (i32, i32) {
    %c0_i32 = arith.constant 0 : i32
    %c0_i32_0 = arith.constant 0 : i32
    %c0_i32_1 = arith.constant 0 : i32
    return %c0_i32, %c0_i32_0 : i32, i32
  }
  func.func @transform_5(%arg0: i32, %arg1: i32) -> (i32, i32, i32, i32) {
    %c0_i32 = arith.constant 0 : i32
    %c0_i32_0 = arith.constant 0 : i32
    %c0_i32_1 = arith.constant 0 : i32
    return %arg0, %arg1, %c0_i32, %c0_i32_0 : i32, i32, i32, i32
  }
}

</mosaic_0001>

<bundles_post_ra>
// kernel: residual_block_forward.3
= control target key start
LH: loop header
LB: loop body
LE: loop exit
PB: predicated region body
PF: predicated region fallthrough
CT: control target
= control target key end

     0   :  { %s1535_s12 = smov 0   ;;  %s1537_s13 = smov 0   ;;  %s1880_s0 = inlined_call_operand.vmem [shape: bf16[2,9,9,128], index: 0, kind: input, shape index: {}]   ;;  %s1881_s1 = inlined_call_operand.vmem [shape: bf16[512,256], index: 1, kind: input, shape index: {}]   ;;  %s1882_s2 = inlined_call_operand.vmem [shape: bf16[2,8,8,256], index: 2, kind: output, shape index: {0}]   ;;  %s1883_s3 = inlined_call_operand.vmem [shape: f32[2,1,8,256], index: 3, kind: output, shape index: {1}]  }
   0x1   :  { %s1539_s14 = smov 0  }
   0x2 LB: > { %s26_s15 = sadd.s32 1, %s1509_s13  ;;  %p1232_p0 = scmp.ge.s32.totalorder %s1513_s14, 1  ;;  %s1513_s14 = sphi %s1539_s14, %s14_s14   ;;  %s1509_s13 = sphi %s1537_s13, %s1885_s13   ;;  %s1505_s12 = sphi %s1535_s12, %s1884_s12  }
   0x3   : > { %p28_p1 = scmp.ge.s32.totalorder %s26_s15, 2  ;;  %p156_p2 = scmp.lt.s32.totalorder %s1513_s14, 3 }
   0x5   : > { %s1887_s15 = smov (%p28_p1, %s26_s15), 0  ;;  %p157_p3 = pnand %p1232_p0, %p156_p2 }
   0x6   : > { %v1387_v0 = vld [vmem:[%s1881_s1 + $0x4] ss:$8 sps:$4 sm:$0xff] (!%p157_p3)   ;;  %v1391_v2 = vld [vmem:[%s1881_s1] ss:$8 sps:$4 sm:$0xff] (!%p157_p3)   ;;  %v1393_v4 = vld [vmem:[%s1881_s1 + $0x14] ss:$8 sps:$4 sm:$0xff] (!%p157_p3)  }
   0x7   : > { %160 = sbr.rel (%p157_p3) target bundleno = 332 (0x14c), region = 28  ;;  %v1389_v1 = vld [vmem:[%s1881_s1 + $0x104] ss:$8 sps:$4 sm:$0xff] (!%p157_p3)   ;;  %788 = vmatprep.subr.bf16.mxu1 (!%p157_p3), %v1387_v0  ;;  %v1392_v3 = vld [vmem:[%s1881_s1 + $0x100] ss:$8 sps:$4 sm:$0xff] (!%p157_p3)   ;;  %p194_p4 = scmp.lt.s32.totalorder (!%p157_p3), %s1505_s12, 1 }
   0x8   : > { %861 = vmatprep.subr.bf16.mxu0 (!%p157_p3), %v1389_v1  ;;  %789 = vmatpush1.bf16.msra.mxu1 (!%p157_p3), %v1391_v2  ;;  %v1395_v5 = vld [vmem:[%s1881_s1 + $0x114] ss:$8 sps:$4 sm:$0xff] (!%p157_p3)   ;;  %v1397_v6 = vld [vmem:[%s1881_s1 + $0x10] ss:$8 sps:$4 sm:$0xff] (!%p157_p3)   ;;  %v1399_v8 = vld [vmem:[%s1881_s1 + $0x24] ss:$8 sps:$4 sm:$0xff] (!%p157_p3)  }
   0x9   : > { %862 = vmatpush1.bf16.msra.mxu0 (!%p157_p3), %v1392_v3  ;;  %790 = vmatprep.subr.bf16.mxu1 (!%p157_p3), %v1393_v4  ;;  %v1398_v7 = vld [vmem:[%s1881_s1 + $0x110] ss:$8 sps:$4 sm:$0xff] (!%p157_p3)   ;;  %v1401_v9 = vld [vmem:[%s1881_s1 + $0x124] ss:$8 sps:$4 sm:$0xff] (!%p157_p3)   ;;  %v1403_v10 = vld [vmem:[%s1881_s1 + $0x20] ss:$8 sps:$4 sm:$0xff] (!%p157_p3)  }
   0xa   : > { %863 = vmatprep.subr.bf16.mxu0 (!%p157_p3), %v1395_v5  ;;  %v1404_v11 = vld [vmem:[%s1881_s1 + $0x120] ss:$8 sps:$4 sm:$0xff] (!%p157_p3)   ;;  %v1405_v12 = vld [vmem:[%s1881_s1 + $0x34] ss:$8 sps:$4 sm:$0xff] (!%p157_p3)   ;;  %v1409_v14 = vld [vmem:[%s1881_s1 + $0x30] ss:$8 sps:$4 sm:$0xff] (!%p157_p3)  }
   0xb   : > { %v1407_v13 = vld [vmem:[%s1881_s1 + $0x134] ss:$8 sps:$4 sm:$0xff] (!%p157_p3)   ;;  %v1410_v15 = vld [vmem:[%s1881_s1 + $0x130] ss:$8 sps:$4 sm:$0xff] (!%p157_p3)   ;;  %v1411_v16 = vld [vmem:[%s1881_s1 + $0x44] ss:$8 sps:$4 sm:$0xff] (!%p157_p3)  }
   0xc   : > { %791 = vmatpush1.bf16.msra.mxu1 (!%p157_p3), %v1397_v6  ;;  %v1413_v17 = vld [vmem:[%s1881_s1 + $0x144] ss:$8 sps:$4 sm:$0xff] (!%p157_p3)   ;;  %v1415_v18 = vld [vmem:[%s1881_s1 + $0x40] ss:$8 sps:$4 sm:$0xff] (!%p157_p3)   ;;  %v1417_v20 = vld [vmem:[%s1881_s1 + $0x54] ss:$8 sps:$4 sm:$0xff] (!%p157_p3)  }
   0xd   : > { %864 = vmatpush1.bf16.msra.mxu0 (!%p157_p3), %v1398_v7  ;;  %792 = vmatprep.subr.bf16.mxu1 (!%p157_p3), %v1399_v8  ;;  %v1416_v19 = vld [vmem:[%s1881_s1 + $0x140] ss:$8 sps:$4 sm:$0xff] (!%p157_p3)   ;;  %v1419_v21 = vld [vmem:[%s1881_s1 + $0x154] ss:$8 sps:$4 sm:$0xff] (!%p157_p3)   ;;  %v1421_v22 = vld [vmem:[%s1881_s1 + $0x50] ss:$8 sps:$4 sm:$0xff] (!%p157_p3)  }
   0xe   : > { %865 = vmatprep.subr.bf16.mxu0 %v1401_v9  ;;  %v1422_v23 = vld [vmem:[%s1881_s1 + $0x150] ss:$8 sps:$4 sm:$0xff]   ;;  %v1423_v24 = vld [vmem:[%s1881_s1 + $0x64] ss:$8 sps:$4 sm:$0xff]   ;;  %v1427_v26 = vld [vmem:[%s1881_s1 + $0x60] ss:$8 sps:$4 sm:$0xff]  }
   0xf   : > { %v1425_v25 = vld [vmem:[%s1881_s1 + $0x164] ss:$8 sps:$4 sm:$0xff]   ;;  %v1428_v27 = vld [vmem:[%s1881_s1 + $0x160] ss:$8 sps:$4 sm:$0xff]   ;;  %v1429_v28 = vld [vmem:[%s1881_s1 + $0x74] ss:$8 sps:$4 sm:$0xff]  }
  0x10   : > { %793 = vmatpush1.bf16.msra.mxu1 %v1403_v10  ;;  %v1431_v29 = vld [vmem:[%s1881_s1 + $0x174] ss:$8 sps:$4 sm:$0xff]   ;;  %v1433_v30 = vld [vmem:[%s1881_s1 + $0x70] ss:$8 sps:$4 sm:$0xff]   ;;  %v1435_v32 = vld [vmem:[%s1881_s1 + $0x84] ss:$8 sps:$4 sm:$0xff]  }
  0x11   : > { %866 = vmatpush1.bf16.msra.mxu0 %v1404_v11  ;;  %794 = vmatprep.subr.bf16.mxu1 %v1405_v12  ;;  %v1434_v31 = vld [vmem:[%s1881_s1 + $0x170] ss:$8 sps:$4 sm:$0xff]   ;;  %v1437_v33 = vld [vmem:[%s1881_s1 + $0x184] ss:$8 sps:$4 sm:$0xff]   ;;  %v1439_v34 = vld [vmem:[%s1881_s1 + $0x80] ss:$8 sps:$4 sm:$0xff]  }
  0x12   : > { %867 = vmatprep.subr.bf16.mxu0 %v1407_v13  ;;  %v1440_v35 = vld [vmem:[%s1881_s1 + $0x180] ss:$8 sps:$4 sm:$0xff]   ;;  %s1889_s12 = smov (!%p194_p4, %s1505_s12), 1  ;;  %v1441_v36 = vld [vmem:[%s1881_s1 + $0x94] ss:$8 sps:$4 sm:$0xff]   ;;  %vm307_vm0 = vcmask 1046528  }
  0x13   : > { %v1443_v37 = vld [vmem:[%s1881_s1 + $0x194] ss:$8 sps:$4 sm:$0xff]   ;;  %v1445_v38 = vld [vmem:[%s1881_s1 + $0x90] ss:$8 sps:$4 sm:$0xff]   ;;  %s1362_s25 = smul.u32 72, %s1889_s12  ;;  %s1337_s10 = sshll.u32 %s1889_s12, 4 }
  0x14   : > { %795 = vmatpush1.bf16.msra.mxu1 %v1409_v14  ;;  %v1446_v39 = vld [vmem:[%s1881_s1 + $0x190] ss:$8 sps:$4 sm:$0xff]   ;;  %v1447_v40 = vld [vmem:[%s1881_s1 + $0xa4] ss:$8 sps:$4 sm:$0xff]   ;;  %v1451_v42 = vld [vmem:[%s1881_s1 + $0xa0] ss:$8 sps:$4 sm:$0xff]   ;;  %s218_s18 = scalar_lea.vmem %s1883_s3, %s1337_s10 }
  0x15   : > { %868 = vmatpush1.bf16.msra.mxu0 %v1410_v15  ;;  %796 = vmatprep.subr.bf16.mxu1 %v1411_v16  ;;  %v1449_v41 = vld [vmem:[%s1881_s1 + $0x1a4] ss:$8 sps:$4 sm:$0xff]   ;;  %v1452_v43 = vld [vmem:[%s1881_s1 + $0x1a0] ss:$8 sps:$4 sm:$0xff]   ;;  %s1695_s11 = scalar_lea.vmem %s1880_s0, %s1362_s25  ;;  %v1453_v44 = vld [vmem:[%s1881_s1 + $0xb4] ss:$8 sps:$4 sm:$0xff]  }
  0x16   : > { %869 = vmatprep.subr.bf16.mxu0 %v1413_v17  ;;  %v1455_v45 = vld [vmem:[%s1881_s1 + $0x1b4] ss:$8 sps:$4 sm:$0xff]   ;;  %v1457_v46 = vld [vmem:[%s1881_s1 + $0xb0] ss:$8 sps:$4 sm:$0xff]   ;;  %v1710_v48 = vld [vmem:[%s1695_s11] sm:$0xf] }
  0x17   : > { %v1458_v47 = vld [vmem:[%s1881_s1 + $0x1b0] ss:$8 sps:$4 sm:$0xff]   ;;  %v1459_v49 = vld [vmem:[%s1881_s1 + $0xc4] ss:$8 sps:$4 sm:$0xff]   ;;  %v1717_v51 = vld [vmem:[%s1695_s11 + $0x8] sm:$0xf]  ;;  %v239_v53 = vunpack.c.l.bf16 %v1710_v48 }
  0x18   : > { %797 = vmatpush1.bf16.msra.mxu1 %v1415_v18  ;;  %v224_v50 = vld [vmem:[%s1695_s11 + $0x4] sm:$0x1]  ;;  %v226_v52 = vld [vmem:[%s1695_s11 + $0xc] sm:$0x1]  ;;  %v241_v55 = vunpack.c.l.bf16 %v1717_v51  ;;  %v1723_v57 = vld [vmem:[%s1695_s11 + $0x8] sm:$0xf] }
  0x19   : > { %870 = vmatpush1.bf16.msra.mxu0 %v1416_v19  ;;  %798 = vmatprep.subr.bf16.mxu1 %v1417_v20  ;;  %v240_v54 = vunpack.c.l.bf16 %v224_v50  ;;  %v242_v56 = vunpack.c.l.bf16 %v226_v52  ;;  %v1239_v58 = vld [vmem:[%s1695_s11 + $0xc] sm:$0x1]  ;;  %v1727_v59 = vld [vmem:[%s1695_s11 + $0x10] sm:$0xf]  ;;  %v308_v61 = vrot.slane %v239_v53, 1  ;;  %v275_v63 = vunpack.c.l.bf16 %v1723_v57 }
  0x1a   : > { %871 = vmatprep.subr.bf16.mxu0 %v1419_v21  ;;  %v1461_v60 = vld [vmem:[%s1881_s1 + $0x1c4] ss:$8 sps:$4 sm:$0xff]   ;;  %v1241_v62 = vld [vmem:[%s1695_s11 + $0x14] sm:$0x1]  ;;  %v276_v0 = vunpack.c.l.bf16 %v1239_v58  ;;  %v277_v1 = vunpack.c.l.bf16 %v1727_v59  ;;  %v1463_v2 = vld [vmem:[%s1881_s1 + $0xc0] ss:$8 sps:$4 sm:$0xff]  }
  0x1b   : > { %v1464_v3 = vld [vmem:[%s1881_s1 + $0x1c0] ss:$8 sps:$4 sm:$0xff]   ;;  %v309_v4 = vrot.slane %v240_v54, 1  ;;  %v311_v5 = vrot.slane %v241_v55, 1  ;;  %v312_v6 = vrot.slane %v242_v56, 1  ;;  %v278_v7 = vunpack.c.l.bf16 %v1241_v62 }
  0x1c   : > { %799 = vmatpush1.bf16.msra.mxu1 %v1421_v22  ;;  %v1742_v8 = vld [vmem:[%s1695_s11 + $0x10] sm:$0xf]  ;;  %v1465_v9 = vld [vmem:[%s1881_s1 + $0xd4] ss:$8 sps:$4 sm:$0xff]   ;;  %v356_v10 = vrot.slane %v275_v63, 1  ;;  %v357_v11 = vrot.slane %v276_v0, 1 }
  0x1d   : > { %872 = vmatpush1.bf16.msra.mxu0 %v1422_v23  ;;  %800 = vmatprep.subr.bf16.mxu1 %v1423_v24  ;;  %v359_v12 = vrot.slane %v277_v1, 1  ;;  %v228_v13 = vld [vmem:[%s1695_s11 + $0x14] sm:$0x1]  ;;  %v310_v14 = vsel %vm307_vm0, %v308_v61, %v309_v4  ;;  %v313_v15 = vsel %vm307_vm0, %v311_v5, %v312_v6  ;;  %v360_v16 = vrot.slane %v278_v7, 1  ;;  %v1751_v17 = vld [vmem:[%s1695_s11 + $0x18] sm:$0xf] }
  0x1e   : > { %873 = vmatprep.subr.bf16.mxu0 %v1425_v25  ;;  %v230_v18 = vld [vmem:[%s1695_s11 + $0x1c] sm:$0x1]  ;;  %v389_v20 = vpack.c.bf16 %v313_v15, %v310_v14  ;;  %v358_v21 = vsel %vm307_vm0, %v356_v10, %v357_v11  ;;  %v1759_v22 = vld [vmem:[%s1695_s11 + $0x18] sm:$0xf]  ;;  %v243_v25 = vunpack.c.l.bf16 %v1742_v8  ;;  %v1800_v52 = vld [vmem:[%s1695_s11 + $0x28] sm:$0xf]  ;;  %v1254_v15 = vcombine.low %v1710_v48, %v1717_v51 }
  0x1f   : > { %v1467_v19 = vld [vmem:[%s1881_s1 + $0x1d4] ss:$8 sps:$4 sm:$0xff]   ;;  %v361_v24 = vsel %vm307_vm0, %v359_v12, %v360_v16  ;;  %v234_v53 = vld [vmem:[%s1695_s11 + $0x2c] sm:$0x1]  ;;  %v1804_v56 = vld [vmem:[%s1695_s11 + $0x28] sm:$0xf]  ;;  %v1255_v16 = vcombine.low %v1723_v57, %v1727_v59 }
  0x20   : > { %801 = vmatpush1.bf16.msra.mxu1 %v1427_v26  ;;  %v1243_v23 = vld [vmem:[%s1695_s11 + $0x1c] sm:$0x1]  ;;  %v244_v26 = vunpack.c.l.bf16 %v228_v13  ;;  %820 = vmatprep.mubr.bf16.mxu1 %v389_v20  ;;  %v1247_v58 = vld [vmem:[%s1695_s11 + $0x2c] sm:$0x1]  ;;  %v1808_v62 = vld [vmem:[%s1695_s11 + $0x30] sm:$0xf]  ;;  %v283_v4 = vunpack.c.l.bf16 %v1804_v56 }
  0x21   : > { %874 = vmatpush1.bf16.msra.mxu0 %v1428_v27  ;;  %802 = vmatprep.subr.bf16.mxu1 %v1429_v28  ;;  %v1765_v27 = vld [vmem:[%s1695_s11 + $0x20] sm:$0xf]  ;;  %v1245_v28 = vld [vmem:[%s1695_s11 + $0x24] sm:$0x1]  ;;  %v1249_v63 = vld [vmem:[%s1695_s11 + $0x34] sm:$0x1]  ;;  %v284_v5 = vunpack.c.l.bf16 %v1247_v58  ;;  %v285_v10 = vunpack.c.l.bf16 %v1808_v62 }
  0x22   : > { %875 = vmatprep.subr.bf16.mxu0 %v1431_v29  ;;  %v391_v29 = vpack.c.bf16 %v361_v24, %v358_v21  ;;  %v1481_v6 = vld [vmem:[%s1881_s1 + $0xf0] ss:$8 sps:$4 sm:$0xff]   ;;  %v286_v11 = vunpack.c.l.bf16 %v1249_v63  ;;  %v238_v59 = vld [vmem:[%s1695_s11 + $0x3c] sm:$0x1]  ;;  %vm1074_vm1 = vcmask 1040384   ;;  %vm1077_vm2 = vcmask 1041408  }
  0x23   : > { %v1482_v7 = vld [vmem:[%s1881_s1 + $0x1f0] ss:$8 sps:$4 sm:$0xff]   ;;  %v369_v24 = vrot.slane %v284_v5, 1  ;;  %v371_v48 = vrot.slane %v285_v10, 1 }
  0x24   : > { %803 = vmatpush1.bf16.msra.mxu1 %v1433_v30  ;;  %v245_v30 = vunpack.c.l.bf16 %v1751_v17  ;;  %893 = vmatprep.mubr.bf16.mxu0 %v391_v29  ;;  %v372_v51 = vrot.slane %v286_v11, 1  ;;  %v236_v29 = vld [vmem:[%s1695_s11 + $0x34] sm:$0x1]  ;;  %v237_v57 = vld [vmem:[%s1695_s11 + $0x38] sm:$0xf] }
  0x25   : > { %876 = vmatpush1.bf16.msra.mxu0 %v1434_v31  ;;  %804 = vmatprep.subr.bf16.mxu1 %v1435_v32  ;;  %v246_v31 = vunpack.c.l.bf16 %v230_v18  ;;  %v1469_v32 = vld [vmem:[%s1881_s1 + $0xd0] ss:$8 sps:$4 sm:$0xff]  }
  0x26   : > { %877 = vmatprep.subr.bf16.mxu0 %v1437_v33  ;;  %v1470_v33 = vld [vmem:[%s1881_s1 + $0x1d0] ss:$8 sps:$4 sm:$0xff]  }
  0x27   : > { %v318_v50 = vrot.slane %v246_v31, 1  ;;  %v1251_v31 = vld [vmem:[%s1695_s11 + $0x3c] sm:$0x1] }
  0x28   : > { %805 = vmatpush1.bf16.msra.mxu1 %v1439_v34  ;;  %v279_v34 = vunpack.c.l.bf16 %v1759_v22 }
  0x29   : > { %878 = vmatpush1.bf16.msra.mxu0 %v1440_v35  ;;  %806 = vmatprep.subr.bf16.mxu1 %v1441_v36  ;;  %v280_v35 = vunpack.c.l.bf16 %v1243_v23  ;;  %v1471_v36 = vld [vmem:[%s1881_s1 + $0xe4] ss:$8 sps:$4 sm:$0xff]   ;;  %v368_v23 = vrot.slane %v283_v4, 1 }
  0x2a   : > { %879 = vmatprep.subr.bf16.mxu0 %v1443_v37  ;;  %v1473_v37 = vld [vmem:[%s1881_s1 + $0x1e4] ss:$8 sps:$4 sm:$0xff]   ;;  %v362_v54 = vrot.slane %v279_v34, 1 }
  0x2b   : > { %v363_v55 = vrot.slane %v280_v35, 1 }
  0x2c   : > { %807 = vmatpush1.bf16.msra.mxu1 %v1445_v38  ;;  %v281_v38 = vunpack.c.l.bf16 %v1765_v27 }
  0x2d   : > { %880 = vmatpush1.bf16.msra.mxu0 %v1446_v39  ;;  %808 = vmatprep.subr.bf16.mxu1 %v1447_v40  ;;  %v282_v39 = vunpack.c.l.bf16 %v1245_v28  ;;  %v1475_v40 = vld [vmem:[%s1881_s1 + $0xe0] ss:$8 sps:$4 sm:$0xff]   ;;  %v364_v13 = vsel %vm307_vm0, %v362_v54, %v363_v55  ;;  %v235_v28 = vld [vmem:[%s1695_s11 + $0x30] sm:$0xf] }
  0x2e   : > { %881 = vmatprep.subr.bf16.mxu0 %v1449_v41  ;;  %v1476_v41 = vld [vmem:[%s1881_s1 + $0x1e0] ss:$8 sps:$4 sm:$0xff]  }
  0x2f   : > { %v366_v61 = vrot.slane %v282_v39, 1  ;;  %v252_v39 = vunpack.c.l.bf16 %v236_v29 }
  0x30   : > { %809 = vmatpush1.bf16.msra.mxu1 %v1451_v42  ;;  %v314_v42 = vrot.slane %v243_v25, 1 }
  0x31   : > { %882 = vmatpush1.bf16.msra.mxu0 %v1452_v43  ;;  %810 = vmatprep.subr.bf16.mxu1 %v1453_v44  ;;  %v315_v43 = vrot.slane %v244_v26, 1  ;;  %v1790_v44 = vld [vmem:[%s1695_s11 + $0x20] sm:$0xf]  ;;  %v327_v55 = vrot.slane %v252_v39, 1 }
  0x32   : > { %883 = vmatprep.subr.bf16.mxu0 %v1455_v45  ;;  %v232_v45 = vld [vmem:[%s1695_s11 + $0x24] sm:$0x1]  ;;  %v247_v0 = vunpack.c.l.bf16 %v1790_v44 }
  0x33   : > { %v248_v1 = vunpack.c.l.bf16 %v232_v45 }
  0x34   : > { %811 = vmatpush1.bf16.msra.mxu1 %v1457_v46  ;;  %v1477_v46 = vld [vmem:[%s1881_s1 + $0xf4] ss:$8 sps:$4 sm:$0xff]   ;;  %v320_v18 = vrot.slane %v247_v0, 1 }
  0x35   : > { %884 = vmatpush1.bf16.msra.mxu0 %v1458_v47  ;;  %812 = vmatprep.subr.bf16.mxu1 %v1459_v49  ;;  %v1479_v47 = vld [vmem:[%s1881_s1 + $0x1f4] ss:$8 sps:$4 sm:$0xff]   ;;  %v317_v49 = vrot.slane %v245_v30, 1  ;;  %v1250_v30 = vld [vmem:[%s1695_s11 + $0x38] sm:$0xf] }
  0x36   : > { %885 = vmatprep.subr.bf16.mxu0 %v1461_v60  ;;  %v365_v60 = vrot.slane %v281_v38, 1  ;;  %v373_v38 = vsel %vm307_vm0, %v371_v48, %v372_v51 }
  0x37   : > { %v319_v12 = vsel %vm307_vm0, %v317_v49, %v318_v50  ;;  %v1257_v49 = vcombine.low %v1759_v22, %v1765_v27  ;;  %v1258_v27 = vcombine.low %v1790_v44, %v1800_v52 }
  0x38   : > { %813 = vmatpush1.bf16.msra.mxu1 %v1463_v2  ;;  %v249_v2 = vunpack.c.l.bf16 %v1800_v52  ;;  %v367_v14 = vsel %vm307_vm0, %v365_v60, %v366_v61 }
  0x39   : > { %886 = vmatpush1.bf16.msra.mxu0 %v1464_v3  ;;  %814 = vmatprep.subr.bf16.mxu1 %v1465_v9  ;;  %v250_v3 = vunpack.c.l.bf16 %v234_v53  ;;  %v316_v9 = vsel %vm307_vm0, %v314_v42, %v315_v43  ;;  %v395_v26 = vpack.c.bf16 %v367_v14, %v364_v13  ;;  %v287_v42 = vunpack.c.l.bf16 %v1250_v30 }
  0x3a   : > { %887 = vmatprep.subr.bf16.mxu0 %v1467_v19  ;;  %v321_v19 = vrot.slane %v248_v1, 1  ;;  %v323_v20 = vrot.slane %v249_v2, 1  ;;  %v393_v25 = vpack.c.bf16 %v319_v12, %v316_v9  ;;  %v288_v43 = vunpack.c.l.bf16 %v1251_v31 }
  0x3b   : > { %v324_v21 = vrot.slane %v250_v3, 1  ;;  %v374_v61 = vrot.slane %v287_v42, 1  ;;  %v1259_v3 = vcombine.low %v1804_v56, %v1808_v62 }
  0x3c   : > { %815 = vmatpush1.bf16.msra.mxu1 %v1469_v32  ;;  %v1252_v32 = vld [vmem:[%s1695_s11 + $0x40] sm:$0xf]  ;;  %v322_v34 = vsel %vm307_vm0, %v320_v18, %v321_v19  ;;  %v375_v63 = vrot.slane %v288_v43, 1 }
  0x3d   : > { %888 = vmatpush1.bf16.msra.mxu0 %v1470_v33  ;;  %816 = vmatprep.subr.bf16.mxu1 %v1471_v36  ;;  %v1253_v33 = vld [vmem:[%s1695_s11 + $0x44] sm:$0x1]  ;;  %v325_v35 = vsel %vm307_vm0, %v323_v20, %v324_v21  ;;  %v370_v36 = vsel %vm307_vm0, %v368_v23, %v369_v24  ;;  %v289_v45 = vunpack.c.l.bf16 %v1252_v32  ;;  %s1336_s11 = sshll.u32 %s1889_s12, 6 }
  0x3e   : > { %889 = vmatprep.subr.bf16.mxu0 %v1473_v37  ;;  %v251_v37 = vunpack.c.l.bf16 %v235_v28  ;;  %v397_v50 = vpack.c.bf16 %v325_v35, %v322_v34  ;;  %v399_v54 = vpack.c.bf16 %v373_v38, %v370_v36  ;;  %s1857_s9 = scalar_lea.vmem %s1882_s2, %s1336_s11 }
  0x3f   : > { %v377_v0 = vrot.slane %v289_v45, 1 }
  0x40   : > { %817 = vmatpush1.bf16.msra.mxu1 %v1475_v40  ;;  %v253_v40 = vunpack.c.l.bf16 %v237_v57  ;;  %v326_v53 = vrot.slane %v251_v37, 1 }
  0x41   : > { %890 = vmatpush1.bf16.msra.mxu0 %v1476_v41  ;;  %818 = vmatprep.subr.bf16.mxu1 %v1477_v46  ;;  %v254_v41 = vunpack.c.l.bf16 %v238_v59  ;;  %v290_v46 = vunpack.c.l.bf16 %v1253_v33 }
  0x42   : > { %891 = vmatprep.subr.bf16.mxu0 %v1479_v47  ;;  %v1256_v47 = vcombine.low %v1742_v8, %v1751_v17  ;;  %v329_v58 = vrot.slane %v253_v40, 1  ;;  %v328_v2 = vsel %vm307_vm0, %v326_v53, %v327_v55  ;;  %v376_v17 = vsel %vm307_vm0, %v374_v61, %v375_v63 }
  0x43   : > { %v330_v60 = vrot.slane %v254_v41, 1  ;;  %v378_v1 = vrot.slane %v290_v46, 1 }
  0x44   : > { %819 = vmatpush1.bf16.msra.mxu1 %v1481_v6  ;;  %v1260_v6 = vcombine.low %v235_v28, %v237_v57 }
  0x45   : > { %892 = vmatpush1.bf16.msra.mxu0 %v1482_v7  ;;  %v331_v8 = vsel %vm307_vm0, %v329_v58, %v330_v60  ;;  %v379_v22 = vsel %vm307_vm0, %v377_v0, %v378_v1  ;;  %v1261_v7 = vcombine.low %v1250_v30, %v1252_v32 }
  0x46   : > { %v401_v4 = vpack.c.bf16 %v331_v8, %v328_v2  ;;  %v403_v5 = vpack.c.bf16 %v379_v22, %v376_v17 }
  0x47   : > { %821 = vmatmul.mubr.bf16.vlgmr.msra.gmra.mrb[0].mxu1 %v1254_v15 }
  0x48   : > { %894 = vmatmul.mubr.bf16.vlgmr.msra.gmra.mrb[0].mxu0 %v1255_v16  ;;  %830 = vmatprep.mubr.bf16.mxu1 %v393_v25 }
  0x49   : > { %903 = vmatprep.mubr.bf16.mxu0 %v395_v26 }
  0x4f   : > { %831 = vmatmul.mubr.bf16.gmra.mrb[4].mxu1 %v1256_v47 }
  0x50   : > { %904 = vmatmul.mubr.bf16.gmra.mrb[4].mxu0 %v1257_v49  ;;  %840 = vmatprep.mubr.bf16.mxu1 %v397_v50 }
  0x51   : > { %913 = vmatprep.mubr.bf16.mxu0 %v399_v54 }
  0x57   : > { %841 = vmatmul.mubr.bf16.gmra.mrb[8].mxu1 %v1258_v27 }
  0x58   : > { %914 = vmatmul.mubr.bf16.gmra.mrb[8].mxu0 %v1259_v3  ;;  %850 = vmatprep.mubr.bf16.mxu1 %v401_v4 }
  0x59   : > { %923 = vmatprep.mubr.bf16.mxu0 %v403_v5 }
  0x5f   : > { %851 = vmatmul.mubr.bf16.gmra.mrb[12].mxu1 %v1260_v6 }
  0x60   : > { %924 = vmatmul.mubr.bf16.gmra.mrb[12].mxu0 %v1261_v7 }
 0x11a   : > { %v822_v9 = vpop.f32.mrb[0].mxu1 }
 0x11b   : > { %v895_v10 = vpop.f32.mrb[0].mxu0  ;;  %v824_v12 = vpop.f32.mrb[1].mxu1 }
 0x11c   : > { %v896_v11 = vadd.f32 %v895_v10, %v822_v9  ;;  %v897_v13 = vpop.f32.mrb[1].mxu0  ;;  %v826_v52 = vpop.f32.mrb[2].mxu1 }
 0x11d   : > { %v898_v44 = vadd.f32 %v897_v13, %v824_v12  ;;  %v899_v14 = vpop.f32.mrb[2].mxu0  ;;  %v828_v62 = vpop.f32.mrb[3].mxu1 }
 0x11e   : > { %v900_v56 = vadd.f32 %v899_v14, %v826_v52  ;;  %v901_v15 = vpop.f32.mrb[3].mxu0  ;;  %v1032_v19 = vmul.f32 %v896_v11, %v896_v11 }
 0x11f   : > { %v1338_v16 = vpack.c.bf16 %v898_v44, %v896_v11  ;;  %v902_v18 = vadd.f32 %v901_v15, %v828_v62  ;;  %v1033_v23 = vmul.f32 %v898_v44, %v898_v44 }
 0x120   : > { %v1006_v20 = vadd.f32 %v900_v56, %v896_v11  ;;  %v1034_v21 = vmul.f32 %v900_v56, %v900_v56 }
 0x121   : > { %998 = vst [vmem:[%s1857_s9] sm:$0xff] %v1338_v16  ;;  %v1339_v24 = vpack.c.bf16 %v902_v18, %v900_v56  ;;  %v1019_v25 = vadd.f32 %v902_v18, %v898_v44  ;;  %v1035_v26 = vmul.f32 %v902_v18, %v902_v18 }
 0x122   : > { %v1048_v48 = vadd.f32 %v1034_v21, %v1032_v19  ;;  %v832_v28 = vpop.f32.mrb[4].mxu1 }
 0x123   : > { %999 = vst [vmem:[%s1857_s9 + $0x8] sm:$0xff] %v1339_v24  ;;  %v1061_v51 = vadd.f32 %v1035_v26, %v1033_v23  ;;  %v905_v29 = vpop.f32.mrb[4].mxu0  ;;  %v834_v59 = vpop.f32.mrb[5].mxu1 }
 0x124   : > { %v906_v57 = vadd.f32 %v905_v29, %v832_v28  ;;  %v907_v30 = vpop.f32.mrb[5].mxu0  ;;  %v836_v32 = vpop.f32.mrb[6].mxu1 }
 0x125   : > { %v908_v31 = vadd.f32 %v907_v30, %v834_v59  ;;  %v909_v33 = vpop.f32.mrb[6].mxu0  ;;  %v838_v37 = vpop.f32.mrb[7].mxu1 }
 0x126   : > { %v1007_v34 = vadd.f32 %v1006_v20, %v906_v57  ;;  %v1036_v35 = vmul.f32 %v906_v57, %v906_v57  ;;  %v910_v36 = vadd.f32 %v909_v33, %v836_v32  ;;  %v911_v38 = vpop.f32.mrb[7].mxu0 }
 0x127   : > { %v1340_v39 = vpack.c.bf16 %v908_v31, %v906_v57  ;;  %v1020_v40 = vadd.f32 %v1019_v25, %v908_v31  ;;  %v1037_v41 = vmul.f32 %v908_v31, %v908_v31  ;;  %v912_v42 = vadd.f32 %v911_v38, %v838_v37 }
 0x128   : > { %v1049_v43 = vadd.f32 %v1048_v48, %v1036_v35  ;;  %v1008_v45 = vadd.f32 %v1007_v34, %v910_v36  ;;  %v1038_v46 = vmul.f32 %v910_v36, %v910_v36 }
 0x129   : > { %1000 = vst [vmem:[%s1857_s9 + $0x10] sm:$0xff] %v1340_v39  ;;  %v1062_v47 = vadd.f32 %v1061_v51, %v1037_v41  ;;  %v1341_v49 = vpack.c.bf16 %v912_v42, %v910_v36  ;;  %v1021_v50 = vadd.f32 %v1020_v40, %v912_v42  ;;  %v1039_v53 = vmul.f32 %v912_v42, %v912_v42 }
 0x12a   : > { %v1050_v54 = vadd.f32 %v1049_v43, %v1038_v46  ;;  %v842_v58 = vpop.f32.mrb[8].mxu1 }
 0x12b   : > { %1001 = vst [vmem:[%s1857_s9 + $0x18] sm:$0xff] %v1341_v49  ;;  %v1063_v55 = vadd.f32 %v1062_v47, %v1039_v53  ;;  %v915_v60 = vpop.f32.mrb[8].mxu0  ;;  %v844_v63 = vpop.f32.mrb[9].mxu1 }
 0x12c   : > { %v916_v61 = vadd.f32 %v915_v60, %v842_v58  ;;  %v917_v0 = vpop.f32.mrb[9].mxu0  ;;  %v846_v2 = vpop.f32.mrb[10].mxu1 }
 0x12d   : > { %v918_v1 = vadd.f32 %v917_v0, %v844_v63  ;;  %v919_v8 = vpop.f32.mrb[10].mxu0  ;;  %v848_v3 = vpop.f32.mrb[11].mxu1 }
 0x12e   : > { %v1009_v17 = vadd.f32 %v1008_v45, %v916_v61  ;;  %v1040_v22 = vmul.f32 %v916_v61, %v916_v61  ;;  %v920_v27 = vadd.f32 %v919_v8, %v846_v2  ;;  %v921_v4 = vpop.f32.mrb[11].mxu0 }
 0x12f   : > { %v1342_v5 = vpack.c.bf16 %v918_v1, %v916_v61  ;;  %v1022_v6 = vadd.f32 %v1021_v50, %v918_v1  ;;  %v1041_v7 = vmul.f32 %v918_v1, %v918_v1  ;;  %v922_v9 = vadd.f32 %v921_v4, %v848_v3 }
 0x130   : > { %v1051_v10 = vadd.f32 %v1050_v54, %v1040_v22  ;;  %v1010_v11 = vadd.f32 %v1009_v17, %v920_v27  ;;  %v1042_v12 = vmul.f32 %v920_v27, %v920_v27 }
 0x131   : > { %1002 = vst [vmem:[%s1857_s9 + $0x20] sm:$0xff] %v1342_v5  ;;  %v1064_v13 = vadd.f32 %v1063_v55, %v1041_v7  ;;  %v1343_v44 = vpack.c.bf16 %v922_v9, %v920_v27  ;;  %v1023_v52 = vadd.f32 %v1022_v6, %v922_v9  ;;  %v1043_v14 = vmul.f32 %v922_v9, %v922_v9 }
 0x132   : > { %v1052_v56 = vadd.f32 %v1051_v10, %v1042_v12  ;;  %v852_v15 = vpop.f32.mrb[12].mxu1 }
 0x133   : > { %1003 = vst [vmem:[%s1857_s9 + $0x28] sm:$0xff] %v1343_v44  ;;  %v1065_v62 = vadd.f32 %v1064_v13, %v1043_v14  ;;  %v925_v16 = vpop.f32.mrb[12].mxu0  ;;  %v854_v19 = vpop.f32.mrb[13].mxu1 }
 0x134   : > { %v926_v18 = vadd.f32 %v925_v16, %v852_v15  ;;  %v927_v20 = vpop.f32.mrb[13].mxu0  ;;  %v856_v23 = vpop.f32.mrb[14].mxu1 }
 0x135   : > { %v928_v21 = vadd.f32 %v927_v20, %v854_v19  ;;  %v929_v24 = vpop.f32.mrb[14].mxu0  ;;  %v858_v51 = vpop.f32.mrb[15].mxu1 }
 0x136   : > { %v1011_v25 = vadd.f32 %v1010_v11, %v926_v18  ;;  %v1044_v26 = vmul.f32 %v926_v18, %v926_v18  ;;  %v930_v48 = vadd.f32 %v929_v24, %v856_v23  ;;  %v931_v28 = vpop.f32.mrb[15].mxu0 }
 0x137   : > { %v1344_v29 = vpack.c.bf16 %v928_v21, %v926_v18  ;;  %v1024_v57 = vadd.f32 %v1023_v52, %v928_v21  ;;  %v1045_v59 = vmul.f32 %v928_v21, %v928_v21  ;;  %v932_v30 = vadd.f32 %v931_v28, %v858_v51 }
 0x138   : > { %v1053_v31 = vadd.f32 %v1052_v56, %v1044_v26  ;;  %v1012_v32 = vadd.f32 %v1011_v25, %v930_v48  ;;  %v1046_v33 = vmul.f32 %v930_v48, %v930_v48 }
 0x139   : > { %1004 = vst [vmem:[%s1857_s9 + $0x30] sm:$0xff] %v1344_v29  ;;  %v1066_v34 = vadd.f32 %v1065_v62, %v1045_v59  ;;  %v1345_v35 = vpack.c.bf16 %v932_v30, %v930_v48  ;;  %v1025_v36 = vadd.f32 %v1024_v57, %v932_v30  ;;  %v1047_v37 = vmul.f32 %v932_v30, %v932_v30 }
 0x13a   : > { %v1013_v38 = vrot.slane %v1012_v32, 4  ;;  %v1054_v39 = vadd.f32 %v1053_v31, %v1046_v33 }
 0x13b   : > { %1005 = vst [vmem:[%s1857_s9 + $0x38] sm:$0xff] %v1345_v35  ;;  %v1026_v40 = vrot.slane %v1025_v36, 4  ;;  %v1067_v41 = vadd.f32 %v1066_v34, %v1047_v37 }
 0x13c   : > { %v1014_v42 = vadd.f32 %v1013_v38, %v1012_v32  ;;  %v1055_v43 = vrot.slane %v1054_v39, 4 }
 0x13d   : > { %v1027_v45 = vadd.f32 %v1026_v40, %v1025_v36  ;;  %v1068_v46 = vrot.slane %v1067_v41, 4 }
 0x13e   : > { %v1015_v47 = vrot.slane %v1014_v42, 2  ;;  %v1056_v49 = vadd.f32 %v1055_v43, %v1054_v39 }
 0x13f   : > { %v1028_v50 = vrot.slane %v1027_v45, 2  ;;  %v1069_v53 = vadd.f32 %v1068_v46, %v1067_v41 }
 0x140   : > { %v1016_v54 = vadd.f32 %v1015_v47, %v1014_v42  ;;  %v1057_v55 = vrot.slane %v1056_v49, 2 }
 0x141   : > { %v1029_v58 = vadd.f32 %v1028_v50, %v1027_v45  ;;  %v1070_v60 = vrot.slane %v1069_v53, 2 }
 0x142   : > { %v1017_v61 = vrot.slane %v1016_v54, 1  ;;  %v1058_v63 = vadd.f32 %v1057_v55, %v1056_v49 }
 0x143   : > { %v1030_v0 = vrot.slane %v1029_v58, 1  ;;  %v1071_v1 = vadd.f32 %v1070_v60, %v1069_v53 }
 0x144   : > { %v1059_v2 = vrot.slane %v1058_v63, 1  ;;  %v1018_v17 = vadd.f32 %v1017_v61, %v1016_v54 }
 0x145   : > { %v1072_v8 = vrot.slane %v1071_v1, 1  ;;  %v1031_v27 = vadd.f32 %v1030_v0, %v1029_v58 }
 0x146   : > { %v1060_v22 = vadd.f32 %v1059_v2, %v1058_v63 }
 0x147   : > { %v1073_v3 = vadd.f32 %v1072_v8, %v1071_v1 }
 0x148   : > { %v1075_v4 = vsel %vm1074_vm1, %v1018_v17, %v1060_v22 }
 0x149   : > { %v1078_v5 = vsel %vm1077_vm2, %v1075_v4, 0.0  ;;  %v1076_v6 = vsel %vm1074_vm1, %v1031_v27, %v1073_v3 }
 0x14a   : > { %1080 = vst [vmem:[%s218_s18] sm:$0xff] %v1078_v5  ;;  %v1079_v7 = vsel %vm1077_vm2, %v1076_v6, 0.0 }
 0x14b   : > { %1081 = vst [vmem:[%s218_s18 + $0x8] sm:$0xff] %v1079_v7 }
 0x14c PF: > { %s14_s14 = sadd.s32 1, %s1513_s14   ;;  %s1884_s12 = smov %s1509_s13 }
 0x14d   : > { %p11_p5 = scmp.ge.s32.totalorder %s14_s14, 4   ;;  %s1885_s13 = smov %s1887_s15 }
 0x14f   :  { %13 = sbr.rel (!%p11_p5) target bundleno = 2 (0x2), region = 72 }

// kernel: residual_block_forward.5
= control target key start
LH: loop header
LB: loop body
LE: loop exit
PB: predicated region body
PF: predicated region fallthrough
CT: control target
= control target key end

     0   :  { %s748_s18 = smov 0   ;;  %s750_s19 = smov 0   ;;  %s830_s0 = inlined_call_operand.vmem [shape: bf16[2,8,8,128], index: 0, kind: input, shape index: {}]   ;;  %s831_s1 = inlined_call_operand.vmem [shape: bf16[2,8,8,256], index: 1, kind: input, shape index: {}]   ;;  %s832_s2 = inlined_call_operand.vmem [shape: f32[1,128], index: 2, kind: input, shape index: {}]   ;;  %s833_s3 = inlined_call_operand.vmem [shape: f32[1,128], index: 3, kind: input, shape index: {}]   ;;  %s834_s4 = inlined_call_operand.vmem [shape: f32[1,128], index: 4, kind: input, shape index: {}]   ;;  %s835_s5 = inlined_call_operand.vmem [shape: f32[2,8,8,128], index: 5, kind: output, shape index: {}]  }
   0x1   :  { %s752_s20 = smov 0   ;;  %s754_s21 = smov 0  }
   0x2   :  { %s756_s22 = smov 0  }
   0x3 LB: > { %s27_s23 = sadd.s32 1, %s712_s21  ;;  %p71_p1 = scmp.ne.s32.totalorder %s704_s19, %s700_s18  ;;  %s716_s22 = sphi %s756_s22, %s15_s22   ;;  %s712_s21 = sphi %s754_s21, %s839_s21   ;;  %s708_s20 = sphi %s752_s20, %s838_s20   ;;  %s704_s19 = sphi %s750_s19, %s837_s19   ;;  %s700_s18 = sphi %s748_s18, %s836_s18  }
   0x4   : > { %p29_p0 = scmp.ge.s32.totalorder %s27_s23, 2  ;;  %p72_p2 = scmp.eq.s32.totalorder %s716_s22, 0 }
   0x5   : > { %s64_s25 = sadd.s32 1, %s704_s19  ;;  %p574_p5 = scmp.ge.s32.totalorder %s716_s22, 2 }
   0x6   : > { %s841_s23 = smov (%p29_p0, %s27_s23), 0  ;;  %p73_p3 = por %p72_p2, %p71_p1 }
   0x7   : > { %s59_s24 = ssub.s32 %s712_s21, %s841_s23  ;;  %197 = sbr.rel (%p574_p5) target bundleno = 23 (0x17), region = 28 }
   0x8   : > { %p62_p4 = scmp.eq.s32.totalorder %s59_s24, 0 }
   0xa   : > { %s783_s26 = scalar_select %p62_p4, %s704_s19, %s64_s25  }
   0xe   : > { %213 = sbr.rel (!%p73_p3) target bundleno = 23 (0x17), region = 36  ;;  %s215_s27 = sand.u32 (%p73_p3), 1, %s704_s19  }
   0xf   : > { %s597_s28 = sshll.u32 (%p73_p3), %s712_s21, 6  ;;  %s575_s29 = sshll.u32 (%p73_p3), %s215_s27, 5 }
  0x10   : > { %s502_s7 = scalar_lea.vmem (%p73_p3), %s831_s1, %s597_s28  ;;  %s217_s8 = scalar_lea.vmem (%p73_p3), [#allocation2], %s575_s29 }
  0x11   : > { %v578_v0 = vld [vmem:[%s502_s7 + $0x4] sm:$0xf] (%p73_p3)  ;;  %v579_v1 = vld [vmem:[%s502_s7 + $0xc] sm:$0xf] (%p73_p3)  ;;  %v580_v2 = vld [vmem:[%s502_s7 + $0x14] sm:$0xf] (%p73_p3) }
  0x12   : > { %241 = vst [vmem:[%s217_s8] sm:$0xf] (%p73_p3), %v578_v0  ;;  %243 = vst [vmem:[%s217_s8 + $0x4] sm:$0xf] (%p73_p3), %v579_v1  ;;  %v581_v3 = vld [vmem:[%s502_s7 + $0x1c] sm:$0xf] (%p73_p3) }
  0x13   : > { %v582_v4 = vld [vmem:[%s502_s7 + $0x24] sm:$0xf] (%p73_p3)  ;;  %245 = vst [vmem:[%s217_s8 + $0x8] sm:$0xf] (%p73_p3), %v580_v2  ;;  %247 = vst [vmem:[%s217_s8 + $0xc] sm:$0xf] (%p73_p3), %v581_v3 }
  0x14   : > { %249 = vst [vmem:[%s217_s8 + $0x10] sm:$0xf] (%p73_p3), %v582_v4  ;;  %v583_v5 = vld [vmem:[%s502_s7 + $0x2c] sm:$0xf] (%p73_p3)  ;;  %v584_v6 = vld [vmem:[%s502_s7 + $0x34] sm:$0xf] (%p73_p3) }
  0x15   : > { %v585_v7 = vld [vmem:[%s502_s7 + $0x3c] sm:$0xf]  ;;  %251 = vst [vmem:[%s217_s8 + $0x14] sm:$0xf] %v583_v5  ;;  %253 = vst [vmem:[%s217_s8 + $0x18] sm:$0xf] %v584_v6 }
  0x16   : > { %255 = vst [vmem:[%s217_s8 + $0x1c] sm:$0xf] %v585_v7 }
  0x17 PF: > { %p586_p6 = scmp.ge.s32.totalorder %s716_s22, 1  ;;  %p293_p7 = scmp.lt.s32.totalorder %s716_s22, 3 }
  0x19   : > { %p294_p8 = pnand %p586_p6, %p293_p7 }
  0x1a   : > { %s300_s9 = sand.u32 (!%p294_p8), 1, %s700_s18   ;;  %p341_p9 = scmp.lt.s32.totalorder (!%p294_p8), %s708_s20, 1  ;;  %v593_v8 = vld [vmem:[%s833_s3] ss:$0 sm:$0xff] (!%p294_p8) }
  0x1b   : > { %297 = sbr.rel (%p294_p8) target bundleno = 52 (0x34), region = 77  ;;  %s587_s10 = sshll.u32 (!%p294_p8), %s300_s9, 5  ;;  %v592_v21 = vld [vmem:[%s832_s2] ss:$0 sm:$0xff] (!%p294_p8) }
  0x1c   : > { %s302_s13 = scalar_lea.vmem (!%p294_p8), [#allocation2], %s587_s10  ;;  %v594_v46 = vld [vmem:[%s834_s4] ss:$0 sm:$0xff] (!%p294_p8) }
  0x1d   : > { %v617_v9 = vld [vmem:[%s302_s13] sm:$0xff] (!%p294_p8)   ;;  %v635_v10 = vld [vmem:[%s302_s13 + $0x8] sm:$0xff] (!%p294_p8)   ;;  %v636_v11 = vld [vmem:[%s302_s13 + $0x10] sm:$0xff] (!%p294_p8)  }
  0x1e   : > { %v618_v12 = vunpack.c.l.bf16 (!%p294_p8), %v617_v9  ;;  %v619_v13 = vunpack.c.h.bf16 (!%p294_p8), %v617_v9  ;;  %v622_v14 = vunpack.c.l.bf16 (!%p294_p8), %v635_v10  ;;  %v623_v15 = vunpack.c.h.bf16 (!%p294_p8), %v635_v10  ;;  %v637_v16 = vld [vmem:[%s302_s13 + $0x18] sm:$0xff] (!%p294_p8)  }
  0x1f   : > { %v626_v17 = vunpack.c.l.bf16 (!%p294_p8), %v636_v11  ;;  %v627_v18 = vunpack.c.h.bf16 (!%p294_p8), %v636_v11  ;;  %v630_v19 = vunpack.c.l.bf16 (!%p294_p8), %v637_v16  ;;  %v631_v20 = vunpack.c.h.bf16 (!%p294_p8), %v637_v16 }
  0x20   : > { %v415_v22 = vmul.f32 (!%p294_p8), %v618_v12, %v593_v8  ;;  %v416_v23 = vmul.f32 (!%p294_p8), %v619_v13, %v593_v8  ;;  %v417_v24 = vmul.f32 (!%p294_p8), %v622_v14, %v593_v8  ;;  %v418_v25 = vmul.f32 (!%p294_p8), %v623_v15, %v593_v8 }
  0x21   : > { %v419_v29 = vmul.f32 (!%p294_p8), %v626_v17, %v593_v8  ;;  %v420_v30 = vmul.f32 (!%p294_p8), %v627_v18, %v593_v8  ;;  %v421_v31 = vmul.f32 (!%p294_p8), %v630_v19, %v593_v8  ;;  %v422_v32 = vmul.f32 (!%p294_p8), %v631_v20, %v593_v8 }
  0x22   : > { %s843_s20 = smov (!%p341_p9, %s708_s20), 1 }
  0x23   : > { %s598_s14 = sshll.u32 %s843_s20, 5  ;;  %s599_s28 = sshll.u32 %s843_s20, 6 }
  0x24   : > { %s348_s17 = scalar_lea.vmem %s830_s0, %s598_s14  ;;  %s359_s6 = scalar_lea.vmem %s835_s5, %s599_s28 }
  0x25   : > { %v601_v26 = vld [vmem:[%s348_s17] sm:$0xff]   ;;  %v632_v27 = vld [vmem:[%s348_s17 + $0x8] sm:$0xff]   ;;  %v633_v28 = vld [vmem:[%s348_s17 + $0x10] sm:$0xff]  }
  0x26   : > { %v602_v33 = vunpack.c.l.bf16 %v601_v26  ;;  %v603_v34 = vunpack.c.h.bf16 %v601_v26  ;;  %v606_v35 = vunpack.c.l.bf16 %v632_v27  ;;  %v607_v36 = vunpack.c.h.bf16 %v632_v27  ;;  %v634_v37 = vld [vmem:[%s348_s17 + $0x18] sm:$0xff]  }
  0x27   : > { %v610_v38 = vunpack.c.l.bf16 %v633_v28  ;;  %v611_v39 = vunpack.c.h.bf16 %v633_v28  ;;  %v614_v40 = vunpack.c.l.bf16 %v634_v37  ;;  %v615_v41 = vunpack.c.h.bf16 %v634_v37 }
  0x28   : > { %v384_v42 = vmul.f32 %v602_v33, %v592_v21  ;;  %v385_v43 = vmul.f32 %v603_v34, %v592_v21  ;;  %v386_v44 = vmul.f32 %v606_v35, %v592_v21  ;;  %v387_v45 = vmul.f32 %v607_v36, %v592_v21 }
  0x29   : > { %v388_v47 = vmul.f32 %v610_v38, %v592_v21  ;;  %v389_v48 = vmul.f32 %v611_v39, %v592_v21  ;;  %v390_v49 = vmul.f32 %v614_v40, %v592_v21  ;;  %v391_v50 = vmul.f32 %v615_v41, %v592_v21 }
  0x2a   : > { %v423_v51 = vadd.f32 %v415_v22, %v384_v42  ;;  %v424_v52 = vadd.f32 %v416_v23, %v385_v43  ;;  %v425_v53 = vadd.f32 %v417_v24, %v386_v44  ;;  %v426_v54 = vadd.f32 %v418_v25, %v387_v45 }
  0x2b   : > { %v427_v55 = vadd.f32 %v419_v29, %v388_v47  ;;  %v428_v56 = vadd.f32 %v420_v30, %v389_v48  ;;  %v429_v57 = vadd.f32 %v421_v31, %v390_v49  ;;  %v430_v58 = vadd.f32 %v422_v32, %v391_v50 }
  0x2c   : > { %v438_v59 = vadd.f32 %v594_v46, %v423_v51  ;;  %v439_v60 = vadd.f32 %v594_v46, %v424_v52  ;;  %v440_v61 = vadd.f32 %v594_v46, %v425_v53  ;;  %v441_v62 = vadd.f32 %v594_v46, %v426_v54 }
  0x2d   : > { %v442_v63 = vadd.f32 %v594_v46, %v427_v55  ;;  %v443_v0 = vadd.f32 %v594_v46, %v428_v56  ;;  %v444_v1 = vadd.f32 %v594_v46, %v429_v57  ;;  %v445_v2 = vadd.f32 %v594_v46, %v430_v58 }
  0x2e   : > { %v446_v3 = vmax.f32 %v438_v59, 0.0  ;;  %v447_v4 = vmax.f32 %v439_v60, 0.0  ;;  %v448_v5 = vmax.f32 %v440_v61, 0.0  ;;  %v449_v6 = vmax.f32 %v441_v62, 0.0 }
  0x2f   : > { %v450_v7 = vmax.f32 %v442_v63, 0.0  ;;  %v451_v8 = vmax.f32 %v443_v0, 0.0  ;;  %v452_v9 = vmax.f32 %v444_v1, 0.0  ;;  %v453_v10 = vmax.f32 %v445_v2, 0.0 }
  0x30   : > { %454 = vst [vmem:[%s359_s6] sm:$0xff] %v446_v3  ;;  %455 = vst [vmem:[%s359_s6 + $0x8] sm:$0xff] %v447_v4 }
  0x31   : > { %456 = vst [vmem:[%s359_s6 + $0x10] sm:$0xff] %v448_v5  ;;  %457 = vst [vmem:[%s359_s6 + $0x18] sm:$0xff] %v449_v6 }
  0x32   : > { %458 = vst [vmem:[%s359_s6 + $0x20] sm:$0xff] %v450_v7  ;;  %459 = vst [vmem:[%s359_s6 + $0x28] sm:$0xff] %v451_v8 }
  0x33   : > { %460 = vst [vmem:[%s359_s6 + $0x30] sm:$0xff] %v452_v9  ;;  %461 = vst [vmem:[%s359_s6 + $0x38] sm:$0xff] %v453_v10 }
  0x34 PF: > { %s15_s22 = sadd.s32 1, %s716_s22   ;;  %s836_s18 = smov %s704_s19 }
  0x35   : > { %p12_p10 = scmp.ge.s32.totalorder %s15_s22, 4   ;;  %s837_s19 = smov %s783_s26 }
  0x36   : > { %s838_s20 = smov %s712_s21  ;;  %s839_s21 = smov %s841_s23 }
  0x37   :  { %14 = sbr.rel (!%p12_p10) target bundleno = 3 (0x3), region = 119 }

// kernel: residual_block_forward.4
= control target key start
LH: loop header
LB: loop body
LE: loop exit
PB: predicated region body
PF: predicated region fallthrough
CT: control target
= control target key end

     0   :  { %s2512_s18 = smov 0   ;;  %s2514_s19 = smov 0   ;;  %s3156_s0 = inlined_call_operand.vmem [shape: bf16[2,8,8,256], index: 0, kind: input, shape index: {}]   ;;  %s3157_s1 = inlined_call_operand.vmem [shape: f32[1,128], index: 1, kind: input, shape index: {}]   ;;  %s3158_s2 = inlined_call_operand.vmem [shape: f32[1,128], index: 2, kind: input, shape index: {}]   ;;  %s3159_s3 = inlined_call_operand.vmem [shape: bf16[1152,128], index: 3, kind: input, shape index: {}]   ;;  %s3160_s4 = inlined_call_operand.vmem [shape: bf16[2,8,8,128], index: 4, kind: output, shape index: {0}]   ;;  %s3161_s5 = inlined_call_operand.vmem [shape: f32[2,1,8,128], index: 5, kind: output, shape index: {1}]  }
   0x1   :  { %s2516_s20 = smov 0   ;;  %s2518_s21 = smov 0  }
   0x2   :  { %s2520_s22 = smov 0  }
   0x3 LB: > { %s28_s23 = sadd.s32 1, %s2474_s21  ;;  %p42_p1 = scmp.ne.s32.totalorder %s2466_s19, %s2462_s18  ;;  %s2478_s22 = sphi %s2520_s22, %s16_s22   ;;  %s2474_s21 = sphi %s2518_s21, %s3169_s21   ;;  %s2470_s20 = sphi %s2516_s20, %s3168_s20   ;;  %s2466_s19 = sphi %s2514_s19, %s3167_s19   ;;  %s2462_s18 = sphi %s2512_s18, %s3166_s18  }
   0x4   : > { %p30_p0 = scmp.ge.s32.totalorder %s28_s23, 2  ;;  %p43_p2 = scmp.eq.s32.totalorder %s2478_s22, 0 }
   0x5   : > { %s35_s25 = sadd.s32 1, %s2466_s19  ;;  %p1894_p5 = scmp.ge.s32.totalorder %s2478_s22, 2 }
   0x6   : > { %s3171_s23 = smov (%p30_p0, %s28_s23), 0  ;;  %p44_p3 = por %p43_p2, %p42_p1 }
   0x7   : > { %s32_s24 = ssub.s32 %s2474_s21, %s3171_s23  ;;  %196 = sbr.rel (%p1894_p5) target bundleno = 23 (0x17), region = 28 }
   0x8   : > { %p33_p4 = scmp.eq.s32.totalorder %s32_s24, 0 }
   0xa   : > { %s2547_s26 = scalar_select %p33_p4, %s2466_s19, %s35_s25  }
   0xe   : > { %199 = sbr.rel (!%p44_p3) target bundleno = 23 (0x17), region = 32  ;;  %s201_s27 = sand.u32 (%p44_p3), 1, %s2466_s19  }
   0xf   : > { %s2011_s28 = sshll.u32 (%p44_p3), %s2474_s21, 6  ;;  %s1895_s29 = sshll.u32 (%p44_p3), %s201_s27, 5 }
  0x10   : > { %s206_s7 = scalar_lea.vmem (%p44_p3), %s3156_s0, %s2011_s28  ;;  %s203_s8 = scalar_lea.vmem (%p44_p3), [#allocation3], %s1895_s29 }
  0x11   : > { %v222_v0 = vld [vmem:[%s206_s7] sm:$0xf] (%p44_p3)  ;;  %v224_v1 = vld [vmem:[%s206_s7 + $0x8] sm:$0xf] (%p44_p3)  ;;  %v226_v2 = vld [vmem:[%s206_s7 + $0x10] sm:$0xf] (%p44_p3) }
  0x12   : > { %223 = vst [vmem:[%s203_s8] sm:$0xf] (%p44_p3), %v222_v0  ;;  %225 = vst [vmem:[%s203_s8 + $0x4] sm:$0xf] (%p44_p3), %v224_v1  ;;  %v228_v3 = vld [vmem:[%s206_s7 + $0x18] sm:$0xf] (%p44_p3) }
  0x13   : > { %v230_v4 = vld [vmem:[%s206_s7 + $0x20] sm:$0xf] (%p44_p3)  ;;  %227 = vst [vmem:[%s203_s8 + $0x8] sm:$0xf] (%p44_p3), %v226_v2  ;;  %229 = vst [vmem:[%s203_s8 + $0xc] sm:$0xf] (%p44_p3), %v228_v3 }
  0x14   : > { %231 = vst [vmem:[%s203_s8 + $0x10] sm:$0xf] (%p44_p3), %v230_v4  ;;  %v232_v5 = vld [vmem:[%s206_s7 + $0x28] sm:$0xf] (%p44_p3)  ;;  %v234_v6 = vld [vmem:[%s206_s7 + $0x30] sm:$0xf] (%p44_p3) }
  0x15   : > { %v236_v7 = vld [vmem:[%s206_s7 + $0x38] sm:$0xf]  ;;  %233 = vst [vmem:[%s203_s8 + $0x14] sm:$0xf] %v232_v5  ;;  %235 = vst [vmem:[%s203_s8 + $0x18] sm:$0xf] %v234_v6 }
  0x16   : > { %237 = vst [vmem:[%s203_s8 + $0x1c] sm:$0xf] %v236_v7 }
  0x17 PF: > { %p1898_p6 = scmp.ge.s32.totalorder %s2478_s22, 1  ;;  %p275_p7 = scmp.lt.s32.totalorder %s2478_s22, 3 }
  0x19   : > { %p276_p8 = pnand %p1898_p6, %p275_p7 }
  0x1a   : > { %v2308_v8 = vld [vmem:[%s3159_s3 + $0x40] sm:$0xff] (!%p276_p8)   ;;  %v2312_v12 = vld [vmem:[%s3159_s3 + $0x48] sm:$0xff] (!%p276_p8)   ;;  %v2480_v13 = vmov (!%p276_p8), 0.0   ;;  %vm423_vm0 = vcmask (!%p276_p8), 1040384   ;;  %v2316_v20 = vld [vmem:[%s3159_s3 + $0x50] sm:$0xff] (!%p276_p8)   ;;  %s282_s28 = sand.u32 (!%p276_p8), 1, %s2462_s18  }
  0x1b   : > { %279 = sbr.rel (%p276_p8) target bundleno = 377 (0x179), region = 73  ;;  %v2309_v9 = vld [vmem:[%s3159_s3 + $0xc0] sm:$0xff] (!%p276_p8)   ;;  %2055 = vmatprep.subr.bf16.mxu0 (!%p276_p8), %v2308_v8  ;;  %v2572_v14 = vrot.slane (!%p276_p8), %v2480_v13, 7  ;;  %v2313_v15 = vld [vmem:[%s3159_s3 + $0xc8] sm:$0xff] (!%p276_p8)   ;;  %v2317_v21 = vld [vmem:[%s3159_s3 + $0xd0] sm:$0xff] (!%p276_p8)   ;;  %s1899_s10 = sshll.u32 (!%p276_p8), %s282_s28, 5 }
  0x1c   : > { %v2310_v10 = vld [vmem:[%s3159_s3] sm:$0xff] (!%p276_p8)   ;;  %2095 = vmatprep.subr.bf16.mxu1 (!%p276_p8), %v2309_v9  ;;  %v2314_v16 = vld [vmem:[%s3159_s3 + $0x8] sm:$0xff] (!%p276_p8)   ;;  %v2318_v22 = vld [vmem:[%s3159_s3 + $0x10] sm:$0xff] (!%p276_p8)   ;;  %s2663_s27 = scalar_lea.vmem (!%p276_p8), [#allocation3], %s1899_s10  ;;  %vm535_vm3 = vcmask (!%p276_p8), 1046528   ;;  %vm568_vm4 = vcmask (!%p276_p8), 1045504  }
  0x1d   : > { %v2311_v11 = vld [vmem:[%s3159_s3 + $0x80] sm:$0xff] (!%p276_p8)   ;;  %2056 = vmatpush3.bf16.msra.mxu0 (!%p276_p8), %v2310_v10  ;;  %v2582_v17 = vsel (!%p276_p8), %vm423_vm0, 0.0, %v2572_v14  ;;  %v2315_v18 = vld [vmem:[%s3159_s3 + $0x88] sm:$0xff] (!%p276_p8)   ;;  %v433_v19 = vsel (!%p276_p8), %vm423_vm0, %v2572_v14, 0.0  ;;  %v2319_v23 = vld [vmem:[%s3159_s3 + $0x90] sm:$0xff] (!%p276_p8)   ;;  %vm2481_vm5 = vmmov (!%p276_p8), 1  }
  0x1e   : > { %2096 = vmatpush3.bf16.msra.mxu1 (!%p276_p8), %v2311_v11  ;;  %2057 = vmatprep.subr.bf16.mxu0 (!%p276_p8), %v2312_v12  ;;  %442 = vst [vmem:[#allocation2] sm:$0xff] (!%p276_p8), %v2582_v17  ;;  %443 = vst [vmem:[#allocation2 + $0x8] sm:$0x3] (!%p276_p8), %v433_v19  ;;  %v2320_v24 = vld [vmem:[%s3159_s3 + $0x58] sm:$0xff] (!%p276_p8)   ;;  %v2324_v28 = vld [vmem:[%s3159_s3 + $0x60] sm:$0xff] (!%p276_p8)   ;;  %v536_v5 = vrot.slane (!%p276_p8), %v2582_v17, 1 }
  0x1f   : > { %2097 = vmatprep.subr.bf16.mxu1 (!%p276_p8), %v2313_v15  ;;  %461 = vst [vmem:[#allocation2 + $0x98] sm:$0x3] (!%p276_p8), %v433_v19  ;;  %v2321_v25 = vld [vmem:[%s3159_s3 + $0xd8] sm:$0xff] (!%p276_p8)   ;;  %v2325_v29 = vld [vmem:[%s3159_s3 + $0xe0] sm:$0xff] (!%p276_p8)   ;;  %v2328_v32 = vld [vmem:[%s3159_s3 + $0x68] sm:$0xff] (!%p276_p8)   ;;  %v569_v9 = vrot.slane (!%p276_p8), %v2582_v17, 2 }
  0x20   : > { %v2322_v26 = vld [vmem:[%s3159_s3 + $0x18] sm:$0xff] (!%p276_p8)   ;;  %v2326_v30 = vld [vmem:[%s3159_s3 + $0x20] sm:$0xff] (!%p276_p8)   ;;  %v2329_v33 = vld [vmem:[%s3159_s3 + $0xe8] sm:$0xff] (!%p276_p8)   ;;  %p321_p9 = scmp.lt.s32.totalorder (!%p276_p8), %s2470_s20, 1  ;;  %vm1750_vm7 = vcmask (!%p276_p8), 1041408  }
  0x21   : > { %2058 = vmatpush3.bf16.msra.mxu0 (!%p276_p8), %v2314_v16  ;;  %v2323_v27 = vld [vmem:[%s3159_s3 + $0x98] sm:$0xff] (!%p276_p8)   ;;  %v2327_v31 = vld [vmem:[%s3159_s3 + $0xa0] sm:$0xff] (!%p276_p8)   ;;  %v2330_v34 = vld [vmem:[%s3159_s3 + $0x28] sm:$0xff] (!%p276_p8)  }
  0x22   : > { %2098 = vmatpush3.bf16.msra.mxu1 %v2315_v18  ;;  %2059 = vmatprep.subr.bf16.mxu0 %v2316_v20  ;;  %v2331_v35 = vld [vmem:[%s3159_s3 + $0xa8] sm:$0xff]   ;;  %v2332_v36 = vld [vmem:[%s3159_s3 + $0x70] sm:$0xff]   ;;  %v2336_v40 = vld [vmem:[%s3159_s3 + $0x78] sm:$0xff]   ;;  %s3173_s20 = smov (!%p321_p9, %s2470_s20), 1 }
  0x23   : > { %2099 = vmatprep.subr.bf16.mxu1 %v2317_v21  ;;  %v2333_v37 = vld [vmem:[%s3159_s3 + $0xf0] sm:$0xff]   ;;  %v2337_v41 = vld [vmem:[%s3159_s3 + $0xf8] sm:$0xff]   ;;  %v2014_v44 = vld [vmem:[%s2663_s27] sm:$0xff]   ;;  %s2012_s12 = sshll.u32 %s3173_s20, 5  ;;  %s1902_s15 = sshll.u32 %s3173_s20, 3 }
  0x24   : > { %v2334_v38 = vld [vmem:[%s3159_s3 + $0x30] sm:$0xff]   ;;  %v2338_v42 = vld [vmem:[%s3159_s3 + $0x38] sm:$0xff]   ;;  %v2669_v45 = vld [vmem:[%s3157_s1] ss:$0 sm:$0xff]  ;;  %v2015_v46 = vunpack.c.l.bf16 %v2014_v44  ;;  %v2016_v48 = vunpack.c.h.bf16 %v2014_v44  ;;  %s328_s14 = scalar_lea.vmem %s3160_s4, %s2012_s12  ;;  %s336_s17 = scalar_lea.vmem %s3161_s5, %s1902_s15 }
  0x25   : > { %2060 = vmatpush3.bf16.msra.mxu0 %v2318_v22  ;;  %v2335_v39 = vld [vmem:[%s3159_s3 + $0xb0] sm:$0xff]   ;;  %v2339_v43 = vld [vmem:[%s3159_s3 + $0xb8] sm:$0xff]   ;;  %v2674_v47 = vld [vmem:[%s3158_s2] ss:$0 sm:$0xff] }
  0x26   : > { %2100 = vmatpush3.bf16.msra.mxu1 %v2319_v23  ;;  %2061 = vmatprep.subr.bf16.mxu0 %v2320_v24  ;;  %v2340_v49 = vld [vmem:[%s3159_s3 + $0x140] sm:$0xff]   ;;  %v365_v51 = vmul.f32 %v2015_v46, %v2669_v45  ;;  %v366_v52 = vmul.f32 %v2016_v48, %v2669_v45  ;;  %v2049_v59 = vld [vmem:[%s2663_s27 + $0x8] sm:$0xff]   ;;  %vm2701_vm1 = vmneg %vm423_vm0 }
  0x27   : > { %2101 = vmatprep.subr.bf16.mxu1 %v2321_v25  ;;  %v2341_v50 = vld [vmem:[%s3159_s3 + $0x1c0] sm:$0xff]   ;;  %v2019_v60 = vunpack.c.l.bf16 %v2049_v59  ;;  %v2020_v61 = vunpack.c.h.bf16 %v2049_v59  ;;  %v466_v2 = vld [vmem:[#allocation2 + $0x8] sm:$0x3]  ;;  %vm2708_vm2 = vmpackc.low %vm2701_vm1, %vm2701_vm1 }
  0x28   : > { %v380_v53 = vadd.f32 %v2674_v47, %v365_v51  ;;  %v381_v54 = vadd.f32 %v2674_v47, %v366_v52  ;;  %v537_v12 = vrot.slane %v466_v2, 1  ;;  %v570_v13 = vrot.slane %v466_v2, 2  ;;  %v2050_v21 = vld [vmem:[%s2663_s27 + $0x10] sm:$0xff]   ;;  %vm2437_vm6 = vmpackc.low %vm2481_vm5, %vm2701_vm1 }
  0x29   : > { %2062 = vmatpush3.bf16.msra.mxu0 %v2322_v26  ;;  %v367_v3 = vmul.f32 %v2019_v60, %v2669_v45  ;;  %v368_v4 = vmul.f32 %v2020_v61, %v2669_v45  ;;  %v2342_v26 = vld [vmem:[%s3159_s3 + $0x100] sm:$0xff]   ;;  %v2349_v51 = vld [vmem:[%s3159_s3 + $0x1d0] sm:$0xff]  }
  0x2a   : > { %2102 = vmatpush3.bf16.msra.mxu1 %v2323_v27  ;;  %2063 = vmatprep.subr.bf16.mxu0 %v2324_v28  ;;  %v388_v55 = vmax.f32 %v380_v53, 0.0  ;;  %v389_v56 = vmax.f32 %v381_v54, 0.0  ;;  %v538_v22 = vsel %vm535_vm3, %v536_v5, %v537_v12  ;;  %v571_v25 = vsel %vm568_vm4, %v569_v9, %v570_v13  ;;  %v2352_v13 = vld [vmem:[%s3159_s3 + $0x158] sm:$0xff]   ;;  %v2378_v7 = vld [vmem:[%s3159_s3 + $0x230] sm:$0xff]  }
  0x2b   : > { %2103 = vmatprep.subr.bf16.mxu1 %v2325_v29  ;;  %v382_v10 = vadd.f32 %v2674_v47, %v367_v3  ;;  %v383_v11 = vadd.f32 %v2674_v47, %v368_v4 }
  0x2c   : > { %v406_v57 = vrot.slane %v388_v55, 7  ;;  %v2686_v58 = vrot.slane %v389_v56, 7  ;;  %v2350_v56 = vld [vmem:[%s3159_s3 + $0x110] sm:$0xff]  }
  0x2d   : > { %2064 = vmatpush3.bf16.msra.mxu0 %v2326_v30  ;;  %v390_v15 = vmax.f32 %v382_v10, 0.0  ;;  %v391_v16 = vmax.f32 %v383_v11, 0.0 }
  0x2e   : > { %2104 = vmatpush3.bf16.msra.mxu1 %v2327_v31  ;;  %2065 = vmatprep.subr.bf16.mxu0 %v2328_v32  ;;  %v2690_v62 = vsel %vm423_vm0, 0.0, %v406_v57  ;;  %v434_v63 = vsel %vm423_vm0, %v406_v57, 0.0  ;;  %v426_v0 = vsel %vm423_vm0, 0.0, %v2686_v58  ;;  %v435_v1 = vsel %vm423_vm0, %v2686_v58, 0.0  ;;  %v2343_v31 = vld [vmem:[%s3159_s3 + $0x180] sm:$0xff]  }
  0x2f   : > { %2105 = vmatprep.subr.bf16.mxu1 %v2329_v33  ;;  %445 = vst [vmem:[#allocation2 + $0x18] sm:$0x3] %v434_v63  ;;  %447 = vst [vmem:[#allocation2 + $0x28] sm:$0x3] %v435_v1  ;;  %v2384_v8 = vpack.c.bf16 %v2686_v58, %v406_v57  ;;  %v539_v18 = vrot.slane %v2690_v62, 1  ;;  %v649_v19 = vrot.slane %v2690_v62, 2  ;;  %v2023_v32 = vunpack.c.l.bf16 %v2050_v21 }
  0x30   : > { %v2730_v27 = vrot.slane %v390_v15, 7  ;;  %v2732_v28 = vrot.slane %v391_v16, 7  ;;  %v2765_v46 = vrot.slane %v426_v0, 1  ;;  %v2389_v48 = vpack.c.bf16 %v406_v57, %v2572_v14  ;;  %v2351_v57 = vld [vmem:[%s3159_s3 + $0x190] sm:$0xff]   ;;  %v2051_v1 = vld [vmem:[%s2663_s27 + $0x18] sm:$0xff]  }
  0x31   : > { %2066 = vmatpush3.bf16.msra.mxu0 %v2330_v34  ;;  %2385 = vmatprep.mubr.msk.bf16.mxu1 %vm2708_vm2, %v2384_v8  ;;  %v369_v14 = vmul.f32 %v2023_v32, %v2669_v45  ;;  %v2027_v4 = vunpack.c.l.bf16 %v2051_v1  ;;  %v2028_v8 = vunpack.c.h.bf16 %v2051_v1  ;;  %v2356_v32 = vld [vmem:[%s3159_s3 + $0x160] sm:$0xff]  }
  0x32   : > { %2106 = vmatpush3.bf16.msra.mxu1 %v2331_v35  ;;  %2067 = vmatprep.subr.bf16.mxu0 %v2332_v36  ;;  %v2345_v35 = vld [vmem:[%s3159_s3 + $0x1c8] sm:$0xff]   ;;  %v427_v36 = vsel %vm423_vm0, 0.0, %v2730_v27  ;;  %v437_v44 = vsel %vm423_vm0, %v2732_v28, 0.0  ;;  %v2394_v54 = vpack.c.bf16 %v2732_v28, %v2730_v27 }
  0x33   : > { %2107 = vmatprep.subr.bf16.mxu1 %v2333_v37  ;;  %v2024_v37 = vunpack.c.h.bf16 %v2050_v21  ;;  %451 = vst [vmem:[#allocation2 + $0x48] sm:$0x3] %v437_v44  ;;  %v384_v59 = vadd.f32 %v2674_v47, %v369_v14  ;;  %v2792_v61 = vrot.slane %v427_v36, 1  ;;  %v2794_v63 = vrot.slane %v427_v36, 2  ;;  %v2361_v44 = vld [vmem:[%s3159_s3 + $0x1e8] sm:$0xff]  }
  0x35   : > { %2068 = vmatpush3.bf16.msra.mxu0 %v2334_v38  ;;  %v2344_v38 = vld [vmem:[%s3159_s3 + $0x148] sm:$0xff]   ;;  %v370_v52 = vmul.f32 %v2024_v37, %v2669_v45  ;;  %v392_v2 = vmax.f32 %v384_v59, 0.0 }
  0x36   : > { %2108 = vmatpush3.bf16.msra.mxu1 %v2335_v39  ;;  %2069 = vmatprep.subr.bf16.mxu0 %v2336_v40  ;;  %v468_v20 = vld [vmem:[#allocation2 + $0x18] sm:$0x3]  ;;  %v436_v39 = vsel %vm423_vm0, %v2730_v27, 0.0  ;;  %v2755_v40 = vsel %vm423_vm0, 0.0, %v2732_v28 }
  0x37   : > { %2109 = vmatprep.subr.bf16.mxu1 %v2337_v41  ;;  %v540_v23 = vrot.slane %v468_v20, 1  ;;  %v573_v24 = vrot.slane %v468_v20, 2  ;;  %v2346_v41 = vld [vmem:[%s3159_s3 + $0x108] sm:$0xff]   ;;  %449 = vst [vmem:[#allocation2 + $0x38] sm:$0x3] %v436_v39  ;;  %v385_v60 = vadd.f32 %v2674_v47, %v370_v52  ;;  %v2807_v20 = vrot.slane %v392_v2, 7 }
  0x38   : > { %v2358_v39 = vld [vmem:[%s3159_s3 + $0x120] sm:$0xff]  }
  0x39   : > { %2070 = vmatpush3.bf16.msra.mxu0 %v2338_v42  ;;  %v541_v29 = vsel %vm535_vm3, %v539_v18, %v540_v23  ;;  %v574_v30 = vsel %vm568_vm4, %v649_v19, %v573_v24  ;;  %v2347_v42 = vld [vmem:[%s3159_s3 + $0x188] sm:$0xff]   ;;  %v393_v3 = vmax.f32 %v385_v60, 0.0  ;;  %v2355_v23 = vld [vmem:[%s3159_s3 + $0x198] sm:$0xff]   ;;  %v371_v24 = vmul.f32 %v2027_v4, %v2669_v45 }
  0x3a   : > { %2110 = vmatpush3.bf16.msra.mxu1 %v2339_v43  ;;  %2135 = vmatprep.subr.bf16.mxu0 %v2340_v49  ;;  %v762_v33 = vpack.c.bf16 %v541_v29, %v538_v22  ;;  %v763_v34 = vpack.c.bf16 %v574_v30, %v571_v25  ;;  %v470_v43 = vld [vmem:[#allocation2 + $0x28] sm:$0x3]  ;;  %v2348_v49 = vld [vmem:[%s3159_s3 + $0x150] sm:$0xff]   ;;  %v2354_v22 = vld [vmem:[%s3159_s3 + $0x118] sm:$0xff]   ;;  %v372_v25 = vmul.f32 %v2028_v8, %v2669_v45  ;;  %v429_v30 = vsel %vm423_vm0, 0.0, %v2807_v20 }
  0x3b   : > { %2175 = vmatprep.subr.bf16.mxu1 %v2341_v50  ;;  %v2773_v50 = vrot.slane %v426_v0, 2  ;;  %v543_v53 = vrot.slane %v470_v43, 1  ;;  %v576_v55 = vrot.slane %v470_v43, 2  ;;  %v2353_v0 = vld [vmem:[%s3159_s3 + $0x1d8] sm:$0xff]   ;;  %v2809_v21 = vrot.slane %v393_v3, 7 }
  0x3c   : > { %1405 = vmatprep.mubr.bf16.mxu0 %v762_v33  ;;  %v2853_v43 = vpack.c.bf16 %v2730_v27, %v2686_v58  ;;  %v2360_v27 = vld [vmem:[%s3159_s3 + $0x168] sm:$0xff]  }
  0x3d   : > { %1471 = vmatmul.mubr.bf16.vlgmr.msra.gmra.mrb[0].mxu1 %v763_v34  ;;  %2390 = vmatmul.mubr.msk.bf16.vlgmr.msra.gmra.mrb[0].mxu0 %vm2708_vm2, %v2389_v48  ;;  %v544_v11 = vsel %vm535_vm3, %v2765_v46, %v543_v53  ;;  %v577_v12 = vsel %vm568_vm4, %v2773_v50, %v576_v55  ;;  %v2357_v34 = vld [vmem:[%s3159_s3 + $0x1e0] sm:$0xff]   ;;  %v2835_v36 = vsel %vm423_vm0, 0.0, %v2809_v21  ;;  %v439_v37 = vsel %vm423_vm0, %v2809_v21, 0.0  ;;  %v2877_v55 = vld [vmem:[#allocation2 + $0x18] sm:$0x3] }
  0x3e   : > { %2176 = vmatpush3.bf16.msra.mxu1 %v2343_v31  ;;  %2136 = vmatpush3.bf16.msra.mxu0 %v2342_v26  ;;  %v472_v10 = vld [vmem:[#allocation2 + $0x38] sm:$0x3]  ;;  %v438_v31 = vsel %vm423_vm0, %v2807_v20, 0.0  ;;  %455 = vst [vmem:[#allocation2 + $0x68] sm:$0x3] %v439_v37  ;;  %v386_v48 = vadd.f32 %v2674_v47, %v371_v24  ;;  %v2870_v53 = vrot.slane %v429_v30, 1 }
  0x3f   : > { %2177 = vmatprep.subr.bf16.mxu1 %v2345_v35  ;;  %2137 = vmatprep.subr.bf16.mxu0 %v2344_v38  ;;  %v546_v15 = vrot.slane %v472_v10, 1  ;;  %v579_v16 = vrot.slane %v472_v10, 2  ;;  %453 = vst [vmem:[#allocation2 + $0x58] sm:$0x3] %v438_v31  ;;  %v474_v35 = vld [vmem:[#allocation2 + $0x48] sm:$0x3] }
  0x40   : > { %2395 = vmatprep.mubr.msk.bf16.mxu1 %vm2708_vm2, %v2394_v54  ;;  %v2840_v38 = vrot.slane %v2755_v40, 1  ;;  %v582_v58 = vrot.slane %v474_v35, 2  ;;  %v394_v14 = vmax.f32 %v386_v48, 0.0  ;;  %v2362_v54 = vld [vmem:[%s3159_s3 + $0x128] sm:$0xff]   ;;  %v2366_v31 = vld [vmem:[%s3159_s3 + $0x130] sm:$0xff]  }
  0x41   : > { %v547_v26 = vsel %vm535_vm3, %v2792_v61, %v546_v15  ;;  %v580_v29 = vsel %vm568_vm4, %v2794_v63, %v579_v16  ;;  %v2893_v8 = vld [vmem:[#allocation2 + $0x28] sm:$0x3] }
  0x42   : > { %2178 = vmatpush3.bf16.msra.mxu1 %v2347_v42  ;;  %2138 = vmatpush3.bf16.msra.mxu0 %v2346_v41  ;;  %v771_v33 = vpack.c.bf16 %v547_v26, %v544_v11  ;;  %v772_v45 = vpack.c.bf16 %v580_v29, %v577_v12  ;;  %v2359_v41 = vld [vmem:[%s3159_s3 + $0x1a0] sm:$0xff]   ;;  %v2849_v42 = vrot.slane %v2755_v40, 2  ;;  %v549_v40 = vrot.slane %v474_v35, 1  ;;  %v2364_v29 = vld [vmem:[%s3159_s3 + $0x170] sm:$0xff]  }
  0x43   : > { %2179 = vmatprep.subr.bf16.mxu1 %v2349_v51  ;;  %2139 = vmatprep.subr.bf16.mxu0 %v2348_v49  ;;  %v387_v49 = vadd.f32 %v2674_v47, %v372_v25  ;;  %v2404_v51 = vpack.c.bf16 %v2809_v21, %v2807_v20  ;;  %v2872_v47 = vrot.slane %v429_v30, 2  ;;  %v2882_v59 = vrot.slane %v394_v14, 7  ;;  %v2367_v30 = vld [vmem:[%s3159_s3 + $0x1b0] sm:$0xff]  }
  0x44   : > { %1413 = vmatprep.mubr.bf16.mxu0 %v771_v33  ;;  %v550_v1 = vsel %vm535_vm3, %v2840_v38, %v549_v40  ;;  %v583_v3 = vsel %vm568_vm4, %v2849_v42, %v582_v58  ;;  %v2369_v33 = vld [vmem:[%s3159_s3 + $0x1f8] sm:$0xff]  }
  0x45   : > { %1479 = vmatmul.mubr.bf16.gmra.mrb[4].mxu1 %v772_v45  ;;  %2400 = vmatmul.mubr.msk.bf16.gmra.mrb[4].mxu0 %vm2708_vm2, %v2853_v43  ;;  %v395_v52 = vmax.f32 %v387_v49, 0.0  ;;  %v431_v10 = vsel %vm423_vm0, 0.0, %v2882_v59  ;;  %v440_v11 = vsel %vm423_vm0, %v2882_v59, 0.0  ;;  %v478_v26 = vld [vmem:[#allocation2 + $0x68] sm:$0x3]  ;;  %v650_v45 = vrot.slane %v2877_v55, 2 }
  0x46   : > { %2180 = vmatpush3.bf16.msra.mxu1 %v2351_v57  ;;  %2140 = vmatpush3.bf16.msra.mxu0 %v2350_v56  ;;  %v476_v56 = vld [vmem:[#allocation2 + $0x58] sm:$0x3]  ;;  %v2363_v57 = vld [vmem:[%s3159_s3 + $0x1a8] sm:$0xff]   ;;  %457 = vst [vmem:[#allocation2 + $0x78] sm:$0x3] %v440_v11  ;;  %v555_v48 = vrot.slane %v478_v26, 1 }
  0x47   : > { %2181 = vmatprep.subr.bf16.mxu1 %v2353_v0  ;;  %2141 = vmatprep.subr.bf16.mxu0 %v2352_v13  ;;  %v2884_v60 = vrot.slane %v395_v52, 7  ;;  %v2365_v0 = vld [vmem:[%s3159_s3 + $0x1f0] sm:$0xff]   ;;  %v552_v2 = vrot.slane %v476_v56, 1  ;;  %v585_v4 = vrot.slane %v476_v56, 2  ;;  %v588_v40 = vrot.slane %v478_v26, 2  ;;  %v2370_v58 = vld [vmem:[%s3159_s3 + $0x138] sm:$0xff]  }
  0x48   : > { %2405 = vmatprep.mubr.msk.bf16.mxu1 %vm2708_vm2, %v2404_v51  ;;  %v2955_v51 = vrot.slane %v431_v10, 2  ;;  %v651_v52 = vsel %vm568_vm4, %v649_v19, %v650_v45  ;;  %v1912_v19 = vld [vmem:[#allocation2 + $0x48] sm:$0x3] }
  0x49   : > { %v2901_v12 = vsel %vm423_vm0, 0.0, %v2884_v60  ;;  %v441_v13 = vsel %vm423_vm0, %v2884_v60, 0.0  ;;  %v553_v15 = vsel %vm535_vm3, %v2870_v53, %v552_v2  ;;  %v586_v16 = vsel %vm568_vm4, %v2872_v47, %v585_v4 }
  0x4a   : > { %2182 = vmatpush3.bf16.msra.mxu1 %v2355_v23  ;;  %2142 = vmatpush3.bf16.msra.mxu0 %v2354_v22  ;;  %459 = vst [vmem:[#allocation2 + $0x88] sm:$0x3] %v441_v13  ;;  %v2909_v22 = vld [vmem:[#allocation2 + $0x28] sm:$0x3]  ;;  %v2911_v23 = vld [vmem:[#allocation2 + $0x38] sm:$0x3]  ;;  %v780_v24 = vpack.c.bf16 %v553_v15, %v550_v1  ;;  %v781_v25 = vpack.c.bf16 %v586_v16, %v583_v3 }
  0x4b   : > { %2143 = vmatprep.subr.bf16.mxu0 %v2356_v32  ;;  %2183 = vmatprep.subr.bf16.mxu1 %v2357_v34  ;;  %v2368_v32 = vld [vmem:[%s3159_s3 + $0x178] sm:$0xff]   ;;  %v653_v34 = vrot.slane %v2893_v8, 2  ;;  %v698_v35 = vrot.slane %v2909_v22, 1  ;;  %v701_v37 = vrot.slane %v2911_v23, 1  ;;  %v2414_v49 = vpack.c.bf16 %v2884_v60, %v2882_v59  ;;  %v2983_v13 = vld [vmem:[#allocation2 + $0x48] sm:$0x3] }
  0x4c   : > { %1421 = vmatprep.mubr.bf16.mxu0 %v780_v24  ;;  %v1910_v3 = vld [vmem:[#allocation2 + $0x38] sm:$0x3]  ;;  %v621_v16 = vrot.slane %v2893_v8, 1  ;;  %v733_v17 = vrot.slane %v2911_v23, 2 }
  0x4d   : > { %1487 = vmatmul.mubr.bf16.gmra.mrb[8].mxu1 %v781_v25  ;;  %v480_v14 = vld [vmem:[#allocation2 + $0x78] sm:$0x3]  ;;  %v702_v56 = vsel %vm535_vm3, %v2792_v61, %v701_v37 }
  0x4e   : > { %2184 = vmatpush3.bf16.msra.mxu1 %v2359_v41  ;;  %2144 = vmatpush3.bf16.msra.mxu0 %v2358_v39  ;;  %v2933_v39 = vrot.slane %v2835_v36, 1  ;;  %v2936_v41 = vrot.slane %v2835_v36, 2  ;;  %v2371_v36 = vld [vmem:[%s3159_s3 + $0x1b8] sm:$0xff]   ;;  %v591_v2 = vrot.slane %v480_v14, 2  ;;  %v622_v45 = vsel %vm535_vm3, %v2765_v46, %v621_v16 }
  0x4f   : > { %2185 = vmatprep.subr.bf16.mxu1 %v2361_v44  ;;  %2145 = vmatprep.subr.bf16.mxu0 %v2360_v27  ;;  %v2940_v44 = vpack.c.bf16 %v2807_v20, %v2732_v28  ;;  %v618_v28 = vrot.slane %v2877_v55, 1  ;;  %v2953_v20 = vrot.slane %v431_v10, 1  ;;  %v2963_v27 = vld [vmem:[%s3159_s3 + $0x200] sm:$0xff]   ;;  %v699_v55 = vsel %vm535_vm3, %v2765_v46, %v698_v35  ;;  %v2985_v15 = vld [vmem:[#allocation2 + $0x58] sm:$0x3] }
  0x50   : > { %2415 = vmatprep.mubr.msk.bf16.mxu1 %vm2708_vm2, %v2414_v49  ;;  %v589_v1 = vsel %vm568_vm4, %v2936_v41, %v588_v40  ;;  %v592_v10 = vsel %vm568_vm4, %v2955_v51, %v591_v2  ;;  %v768_v11 = vpack.c.bf16 %v702_v56, %v699_v55  ;;  %v3009_v35 = vld [vmem:[#allocation2 + $0x98] sm:$0x3]  ;;  %v670_v49 = vrot.slane %v2901_v12, 2  ;;  %v2373_v40 = vld [vmem:[%s3159_s3 + $0x208] sm:$0xff]  }
  0x51   : > { %2410 = vmatmul.mubr.msk.bf16.gmra.mrb[8].mxu0 %vm2708_vm2, %v2940_v44  ;;  %v790_v25 = vpack.c.bf16 %v592_v10, %v589_v1  ;;  %v619_v8 = vsel %vm535_vm3, %v539_v18, %v618_v28  ;;  %v751_v46 = vrot.slane %v3009_v35, 2  ;;  %v1916_v28 = vld [vmem:[#allocation2 + $0x68] sm:$0x3]  ;;  %v2374_v10 = vld [vmem:[%s3159_s3 + $0x210] sm:$0xff]  }
  0x52   : > { %2186 = vmatpush3.bf16.msra.mxu1 %v2363_v57  ;;  %2146 = vmatpush3.bf16.msra.mxu0 %v2362_v54  ;;  %v654_v54 = vsel %vm568_vm4, %v2773_v50, %v653_v34  ;;  %v556_v57 = vsel %vm535_vm3, %v2933_v39, %v555_v48  ;;  %v765_v48 = vpack.c.bf16 %v622_v45, %v619_v8 }
  0x53   : > { %2187 = vmatprep.subr.bf16.mxu1 %v2365_v0  ;;  %2147 = vmatprep.subr.bf16.mxu0 %v2364_v29  ;;  %v558_v0 = vrot.slane %v480_v14, 1  ;;  %v766_v26 = vpack.c.bf16 %v654_v54, %v651_v52  ;;  %v656_v29 = vrot.slane %v1910_v3, 2  ;;  %v627_v14 = vrot.slane %v1912_v19, 1  ;;  %v3021_v52 = vld [vmem:[#allocation2 + $0x68] sm:$0x3] }
  0x54   : > { %v3023_v54 = vld [vmem:[#allocation2 + $0x78] sm:$0x3]  ;;  %v3034_v2 = vsel %vm568_vm4, %v569_v9, %v751_v46 }
  0x55   : > { %v559_v4 = vsel %vm535_vm3, %v2953_v20, %v558_v0  ;;  %1495 = vmatmul.mubr.bf16.gmra.mrb[12].mxu1 %v790_v25  ;;  %v657_v34 = vsel %vm568_vm4, %v2794_v63, %v656_v29  ;;  %v665_v0 = vrot.slane %v1916_v28, 2  ;;  %v628_v9 = vsel %vm535_vm3, %v2840_v38, %v627_v14  ;;  %v1920_v25 = vld [vmem:[#allocation2 + $0x88] sm:$0x3] }
  0x56   : > { %2188 = vmatpush3.bf16.msra.mxu1 %v2367_v30  ;;  %2148 = vmatpush3.bf16.msra.mxu0 %v2366_v31  ;;  %v789_v24 = vpack.c.bf16 %v559_v4, %v556_v57  ;;  %v659_v30 = vrot.slane %v1912_v19, 2  ;;  %v704_v31 = vrot.slane %v2983_v13, 1  ;;  %v713_v19 = vrot.slane %v3023_v54, 1 }
  0x57   : > { %2189 = vmatprep.subr.bf16.mxu1 %v2369_v33  ;;  %2149 = vmatprep.subr.bf16.mxu0 %v2368_v32  ;;  %v707_v32 = vrot.slane %v2985_v15, 1  ;;  %v2993_v33 = vpack.c.bf16 %v2882_v59, %v2809_v21  ;;  %v3007_v59 = vld [vmem:[#allocation2 + $0x88] sm:$0x3]  ;;  %v671_v45 = vrot.slane %v1920_v25, 2 }
  0x58   : > { %1429 = vmatprep.mubr.bf16.mxu0 %v789_v24  ;;  %1600 = vmatprep.mubr.bf16.mxu1 %v768_v11  ;;  %v660_v21 = vsel %vm568_vm4, %v2849_v42, %v659_v30  ;;  %v705_v37 = vsel %vm535_vm3, %v2840_v38, %v704_v31  ;;  %v748_v18 = vrot.slane %v3007_v59, 2  ;;  %v714_v38 = vsel %vm535_vm3, %v2953_v20, %v713_v19  ;;  %v1918_v24 = vld [vmem:[#allocation2 + $0x78] sm:$0x3] }
  0x59   : > { %2420 = vmatmul.mubr.msk.bf16.gmra.mrb[12].mxu0 %vm2708_vm2, %v2993_v33  ;;  %v708_v62 = vsel %vm535_vm3, %v2870_v53, %v707_v32  ;;  %v775_v55 = vpack.c.bf16 %v660_v21, %v657_v34  ;;  %v633_v30 = vrot.slane %v1916_v28, 1  ;;  %v668_v8 = vrot.slane %v1918_v24, 2 }
  0x5a   : > { %2190 = vmatpush3.bf16.msra.mxu1 %v2371_v36  ;;  %2150 = vmatpush3.bf16.msra.mxu0 %v2370_v58  ;;  %v1914_v36 = vld [vmem:[#allocation2 + $0x58] sm:$0x3]  ;;  %v624_v58 = vrot.slane %v1910_v3, 1  ;;  %v777_v56 = vpack.c.bf16 %v708_v62, %v705_v37  ;;  %v3029_v1 = vsel %vm568_vm4, %v670_v49, %v748_v18  ;;  %v710_v3 = vrot.slane %v3021_v52, 1 }
  0x5b   : > { %2251 = vmatprep.subr.bf16.mxu1 %v2963_v27  ;;  %2227 = vmatprep.subr.bf16.mxu0 %v2963_v27  ;;  %v662_v57 = vrot.slane %v1914_v36, 2  ;;  %v630_v29 = vrot.slane %v1914_v36, 1  ;;  %v638_v34 = vrot.slane %v2901_v12, 1  ;;  %v716_v21 = vrot.slane %v3007_v59, 1 }
  0x5c   : > { %1535 = vmatprep.mubr.bf16.mxu0 %v766_v26  ;;  %v625_v4 = vsel %vm535_vm3, %v2792_v61, %v624_v58  ;;  %v711_v61 = vsel %vm535_vm3, %v2933_v39, %v710_v3  ;;  %v2375_v26 = vld [vmem:[%s3159_s3 + $0x218] sm:$0xff]   ;;  %v719_v37 = vrot.slane %v3009_v35, 1  ;;  %v634_v18 = vsel %vm535_vm3, %v2933_v39, %v633_v30  ;;  %v2377_v39 = vld [vmem:[%s3159_s3 + $0x228] sm:$0xff]  }
  0x5d   : > { %2425 = vmatmul.mubr.msk.bf16.vlgmr.msra.gmra.mrb[16].mxu1 %vm2708_vm2, %v2853_v43  ;;  %v796_v43 = vpack.c.bf16 %v3034_v2, %v3029_v1  ;;  %v663_v11 = vsel %vm568_vm4, %v2872_v47, %v662_v57  ;;  %v774_v16 = vpack.c.bf16 %v628_v9, %v625_v4  ;;  %v786_v32 = vpack.c.bf16 %v714_v38, %v711_v61 }
  0x5e   : > { %2259 = vmatpush3.bf16.msra.mxu1 %v2963_v27  ;;  %1608 = vmatprep.mubr.bf16.mxu1 %v777_v56  ;;  %v631_v62 = vsel %vm535_vm3, %v2870_v53, %v630_v29  ;;  %v669_v12 = vsel %vm568_vm4, %v2955_v51, %v668_v8  ;;  %v672_v59 = vsel %vm568_vm4, %v670_v49, %v671_v45  ;;  %v730_v28 = vrot.slane %v2909_v22, 2  ;;  %v2380_v22 = vld [vmem:[#allocation2] sm:$0xff] }
  0x5f   : > { %2252 = vmatprep.subr.bf16.mxu1 %v2373_v40  ;;  %v783_v35 = vpack.c.bf16 %v634_v18, %v631_v62  ;;  %v717_v46 = vsel %vm535_vm3, %v638_v34, %v716_v21  ;;  %v720_v53 = vsel %vm535_vm3, %v536_v5, %v719_v37  ;;  %v793_v36 = vpack.c.bf16 %v672_v59, %v669_v12 }
  0x60   : > { %v795_v49 = vpack.c.bf16 %v720_v53, %v717_v46  ;;  %v742_v5 = vrot.slane %v3021_v52, 2  ;;  %v745_v58 = vrot.slane %v3023_v54, 2  ;;  %v731_v23 = vsel %vm568_vm4, %v2773_v50, %v730_v28  ;;  %v2379_v50 = vld [vmem:[%s3159_s3 + $0x238] sm:$0xff]  }
  0x61   : > { %1536 = vmatmul.mubr.bf16.vlgmr.msra.gmra.mrb[16].mxu0 %v765_v48  ;;  %v636_v48 = vrot.slane %v1918_v24, 1  ;;  %v736_v56 = vrot.slane %v2983_v13, 2  ;;  %v739_v57 = vrot.slane %v2985_v15, 2 }
  0x62   : > { %2228 = vmatpush3.bf16.msra.mxu0 %v2963_v27  ;;  %1543 = vmatprep.mubr.bf16.mxu0 %v775_v55  ;;  %v666_v27 = vsel %vm568_vm4, %v2936_v41, %v665_v0  ;;  %v746_v54 = vsel %vm568_vm4, %v2955_v51, %v745_v58 }
  0x63   : > { %2229 = vmatprep.subr.bf16.mxu0 %v2373_v40  ;;  %2260 = vmatpush3.bf16.msra.mxu1 %v2373_v40  ;;  %v784_v31 = vpack.c.bf16 %v666_v27, %v663_v11  ;;  %v637_v14 = vsel %vm535_vm3, %v2953_v20, %v636_v48  ;;  %v743_v20 = vsel %vm568_vm4, %v2936_v41, %v742_v5 }
  0x64   : > { %2253 = vmatprep.subr.bf16.mxu1 %v2374_v10  ;;  %v2438_v41 = vpack.c.bf16 %v2380_v22, %v2884_v60  ;;  %v787_v51 = vpack.c.bf16 %v746_v54, %v743_v20  ;;  %v737_v13 = vsel %vm568_vm4, %v2849_v42, %v736_v56  ;;  %v740_v15 = vsel %vm568_vm4, %v2872_v47, %v739_v57 }
  0x65   : > { %2430 = vmatmul.mubr.msk.bf16.gmra.mrb[20].mxu1 %vm2708_vm2, %v2940_v44  ;;  %v2376_v44 = vld [vmem:[%s3159_s3 + $0x220] sm:$0xff]   ;;  %v778_v6 = vpack.c.bf16 %v740_v15, %v737_v13 }
  0x66   : > { %2230 = vmatpush3.bf16.msra.mxu0 %v2373_v40  ;;  %1616 = vmatprep.mubr.bf16.mxu1 %v786_v32  ;;  %v639_v40 = vrot.slane %v1920_v25, 1 }
  0x67   : > { %2231 = vmatprep.subr.bf16.mxu0 %v2374_v10  ;;  %2261 = vmatpush3.bf16.msra.mxu1 %v2374_v10 }
  0x68   : > { %2254 = vmatprep.subr.bf16.mxu1 %v2375_v26  ;;  %v640_v55 = vsel %vm535_vm3, %v638_v34, %v639_v40 }
  0x69   : > { %1544 = vmatmul.mubr.bf16.gmra.mrb[20].mxu0 %v774_v16  ;;  %v792_v52 = vpack.c.bf16 %v640_v55, %v637_v14 }
  0x6a   : > { %2232 = vmatpush3.bf16.msra.mxu0 %v2374_v10  ;;  %1551 = vmatprep.mubr.bf16.mxu0 %v784_v31 }
  0x6b   : > { %2233 = vmatprep.subr.bf16.mxu0 %v2375_v26  ;;  %2262 = vmatpush3.bf16.msra.mxu1 %v2375_v26 }
  0x6c   : > { %2255 = vmatprep.subr.bf16.mxu1 %v2376_v44 }
  0x6d   : > { %2435 = vmatmul.mubr.msk.bf16.gmra.mrb[24].mxu1 %vm2708_vm2, %v2993_v33  ;;  %v734_v33 = vsel %vm568_vm4, %v2794_v63, %v733_v17 }
  0x6e   : > { %2234 = vmatpush3.bf16.msra.mxu0 %v2375_v26  ;;  %1624 = vmatprep.mubr.bf16.mxu1 %v795_v49  ;;  %v769_v63 = vpack.c.bf16 %v734_v33, %v731_v23 }
  0x6f   : > { %2235 = vmatprep.subr.bf16.mxu0 %v2376_v44  ;;  %2263 = vmatpush3.bf16.msra.mxu1 %v2376_v44 }
  0x70   : > { %2256 = vmatprep.subr.bf16.mxu1 %v2377_v39 }
  0x71   : > { %1552 = vmatmul.mubr.bf16.gmra.mrb[24].mxu0 %v783_v35 }
  0x72   : > { %2236 = vmatpush3.bf16.msra.mxu0 %v2376_v44  ;;  %1559 = vmatprep.mubr.bf16.mxu0 %v793_v36 }
  0x73   : > { %2237 = vmatprep.subr.bf16.mxu0 %v2377_v39  ;;  %2264 = vmatpush3.bf16.msra.mxu1 %v2377_v39 }
  0x74   : > { %2257 = vmatprep.subr.bf16.mxu1 %v2378_v7 }
  0x75   : > { %2439 = vmatmul.mubr.msk.bf16.gmra.mrb[28].mxu1 %vm2437_vm6, %v2438_v41 }
  0x76   : > { %2238 = vmatpush3.bf16.msra.mxu0 %v2377_v39  ;;  %2247 = vmatprep.mubr.bf16.mxu1 %v787_v51 }
  0x77   : > { %2239 = vmatprep.subr.bf16.mxu0 %v2378_v7  ;;  %2265 = vmatpush3.bf16.msra.mxu1 %v2378_v7 }
  0x78   : > { %2258 = vmatprep.subr.bf16.mxu1 %v2379_v50 }
  0x79   : > { %1560 = vmatmul.mubr.bf16.gmra.mrb[28].mxu0 %v792_v52 }
  0x7a   : > { %2240 = vmatpush3.bf16.msra.mxu0 %v2378_v7  ;;  %2243 = vmatprep.mubr.bf16.mxu0 %v769_v63 }
  0x7b   : > { %2241 = vmatprep.subr.bf16.mxu0 %v2379_v50  ;;  %2266 = vmatpush3.bf16.msra.mxu1 %v2379_v50 }
  0x7e   : > { %2242 = vmatpush3.bf16.msra.mxu0 %v2379_v50  ;;  %2248 = vmatmul.mubr.bf16.vlgmr.msra.gmra.mrb[32].mxu1 %v796_v43 }
  0x81   : > { %2244 = vmatmul.mubr.bf16.vlgmr.msra.gmra.mrb[32].mxu0 %v778_v6 }
 0x110   : > { %v2111_v60 = vpop.f32.mrb[0].mxu1  ;;  %v2071_v0 = vpop.f32.mrb[0].mxu0 }
 0x111   : > { %v2112_v3 = vpop.f32.mrb[1].mxu1  ;;  %v2072_v19 = vpop.f32.mrb[1].mxu0 }
 0x112   : > { %v2113_v4 = vadd.f32 %v2112_v3, %v2111_v60  ;;  %v2114_v42 = vpop.f32.mrb[2].mxu1  ;;  %v2073_v9 = vadd.f32 %v2072_v19, %v2071_v0  ;;  %v2074_v10 = vpop.f32.mrb[2].mxu0 }
 0x113   : > { %v2115_v47 = vpop.f32.mrb[3].mxu1  ;;  %v2075_v11 = vpop.f32.mrb[3].mxu0 }
 0x114   : > { %v2116_v27 = vadd.f32 %v2115_v47, %v2114_v42  ;;  %v1473_v16 = vadd.f32 %v2113_v4, %v2073_v9  ;;  %v2076_v61 = vadd.f32 %v2075_v11, %v2074_v10 }
 0x116   : > { %v1476_v38 = vadd.f32 %v2116_v27, %v2076_v61 }
 0x118   : > { %v2117_v24 = vpop.f32.mrb[4].mxu1  ;;  %v2077_v25 = vpop.f32.mrb[4].mxu0 }
 0x119   : > { %v2118_v26 = vpop.f32.mrb[5].mxu1  ;;  %v2078_v1 = vpop.f32.mrb[5].mxu0 }
 0x11a   : > { %v2119_v2 = vadd.f32 %v2118_v26, %v2117_v24  ;;  %v2120_v43 = vpop.f32.mrb[6].mxu1  ;;  %v2079_v29 = vadd.f32 %v2078_v1, %v2077_v25  ;;  %v2080_v30 = vpop.f32.mrb[6].mxu0 }
 0x11b   : > { %v2121_v31 = vpop.f32.mrb[7].mxu1  ;;  %v2081_v32 = vpop.f32.mrb[7].mxu0 }
 0x11c   : > { %v2122_v8 = vadd.f32 %v2121_v31, %v2120_v43  ;;  %v1481_v45 = vadd.f32 %v2119_v2, %v2079_v29  ;;  %v2082_v34 = vadd.f32 %v2081_v32, %v2080_v30 }
 0x11e   : > { %v1484_v21 = vadd.f32 %v2122_v8, %v2082_v34 }
 0x120   : > { %v2123_v37 = vpop.f32.mrb[8].mxu1 }
 0x121   : > { %v2124_v18 = vpop.f32.mrb[9].mxu1 }
 0x122   : > { %v2125_v12 = vadd.f32 %v2124_v18, %v2123_v37  ;;  %v2126_v59 = vpop.f32.mrb[10].mxu1 }
 0x123   : > { %v2127_v53 = vpop.f32.mrb[11].mxu1 }
 0x124   : > { %v2083_v62 = vpop.f32.mrb[8].mxu0  ;;  %v2128_v48 = vadd.f32 %v2127_v53, %v2126_v59 }
 0x125   : > { %v2084_v44 = vpop.f32.mrb[9].mxu0 }
 0x126   : > { %v2085_v35 = vadd.f32 %v2084_v44, %v2083_v62  ;;  %v2086_v46 = vpop.f32.mrb[10].mxu0 }
 0x127   : > { %v2087_v39 = vpop.f32.mrb[11].mxu0 }
 0x128   : > { %v1489_v40 = vadd.f32 %v2125_v12, %v2085_v35  ;;  %v2088_v36 = vadd.f32 %v2087_v39, %v2086_v46  ;;  %v2129_v28 = vpop.f32.mrb[12].mxu1 }
 0x129   : > { %v2130_v5 = vpop.f32.mrb[13].mxu1 }
 0x12a   : > { %v1492_v49 = vadd.f32 %v2128_v48, %v2088_v36  ;;  %v2131_v14 = vadd.f32 %v2130_v5, %v2129_v28  ;;  %v2132_v55 = vpop.f32.mrb[14].mxu1 }
 0x12b   : > { %v2133_v23 = vpop.f32.mrb[15].mxu1 }
 0x12c   : > { %v2089_v17 = vpop.f32.mrb[12].mxu0  ;;  %v2134_v52 = vadd.f32 %v2133_v23, %v2132_v55 }
 0x12d   : > { %v2090_v58 = vpop.f32.mrb[13].mxu0 }
 0x12e   : > { %v2091_v7 = vadd.f32 %v2090_v58, %v2089_v17  ;;  %v2092_v22 = vpop.f32.mrb[14].mxu0 }
 0x12f   : > { %v2093_v33 = vpop.f32.mrb[15].mxu0 }
 0x130   : > { %v3119_v20 = vadd.f32 %v2131_v14, %v2091_v7  ;;  %v2094_v54 = vadd.f32 %v2093_v33, %v2092_v22  ;;  %v2191_v57 = vpop.f32.mrb[16].mxu1 }
 0x131   : > { %v2192_v63 = vpop.f32.mrb[17].mxu1 }
 0x132   : > { %v3121_v56 = vadd.f32 %v2134_v52, %v2094_v54  ;;  %v2193_v51 = vadd.f32 %v2192_v63, %v2191_v57  ;;  %v2194_v13 = vpop.f32.mrb[18].mxu1 }
 0x133   : > { %v2195_v60 = vpop.f32.mrb[19].mxu1 }
 0x134   : > { %v2151_v50 = vpop.f32.mrb[16].mxu0  ;;  %v2196_v3 = vadd.f32 %v2195_v60, %v2194_v13 }
 0x135   : > { %v2152_v41 = vpop.f32.mrb[17].mxu0 }
 0x136   : > { %v2153_v15 = vadd.f32 %v2152_v41, %v2151_v50  ;;  %v2154_v6 = vpop.f32.mrb[18].mxu0 }
 0x137   : > { %v2155_v0 = vpop.f32.mrb[19].mxu0 }
 0x138   : > { %v1538_v19 = vadd.f32 %v2153_v15, %v1473_v16  ;;  %v2156_v4 = vadd.f32 %v2155_v0, %v2154_v6  ;;  %v2197_v10 = vpop.f32.mrb[20].mxu1 }
 0x139   : > { %v2198_v11 = vpop.f32.mrb[21].mxu1 }
 0x13a   : > { %v1541_v42 = vadd.f32 %v2156_v4, %v1476_v38  ;;  %v1603_v9 = vadd.f32 %v2193_v51, %v1538_v19  ;;  %v2199_v24 = vadd.f32 %v2198_v11, %v2197_v10  ;;  %v2200_v25 = vpop.f32.mrb[22].mxu1 }
 0x13b   : > { %v2201_v2 = vpop.f32.mrb[23].mxu1 }
 0x13c   : > { %v2157_v47 = vpop.f32.mrb[20].mxu0  ;;  %v3123_v27 = vadd.f32 %v2196_v3, %v1541_v42  ;;  %v2202_v29 = vadd.f32 %v2201_v2, %v2200_v25 }
 0x13d   : > { %v2158_v61 = vpop.f32.mrb[21].mxu0 }
 0x13e   : > { %v2159_v26 = vadd.f32 %v2158_v61, %v2157_v47  ;;  %v2160_v1 = vpop.f32.mrb[22].mxu0 }
 0x13f   : > { %v2161_v43 = vpop.f32.mrb[23].mxu0 }
 0x140   : > { %v1546_v30 = vadd.f32 %v2159_v26, %v1481_v45  ;;  %v2162_v31 = vadd.f32 %v2161_v43, %v2160_v1  ;;  %v2203_v8 = vpop.f32.mrb[24].mxu1 }
 0x141   : > { %v2204_v34 = vpop.f32.mrb[25].mxu1 }
 0x142   : > { %v1549_v32 = vadd.f32 %v2162_v31, %v1484_v21  ;;  %v1611_v16 = vadd.f32 %v2199_v24, %v1546_v30  ;;  %v2205_v18 = vadd.f32 %v2204_v34, %v2203_v8  ;;  %v2206_v44 = vpop.f32.mrb[26].mxu1 }
 0x143   : > { %v2207_v35 = vpop.f32.mrb[27].mxu1 }
 0x144   : > { %v2163_v38 = vpop.f32.mrb[24].mxu0  ;;  %v1614_v37 = vadd.f32 %v2202_v29, %v1549_v32  ;;  %v2208_v53 = vadd.f32 %v2207_v35, %v2206_v44 }
 0x145   : > { %v2164_v62 = vpop.f32.mrb[25].mxu0 }
 0x146   : > { %v2165_v12 = vadd.f32 %v2164_v62, %v2163_v38  ;;  %v2166_v59 = vpop.f32.mrb[26].mxu0 }
 0x147   : > { %v2167_v46 = vpop.f32.mrb[27].mxu0 }
 0x148   : > { %v1554_v39 = vadd.f32 %v2165_v12, %v1489_v40  ;;  %v2168_v48 = vadd.f32 %v2167_v46, %v2166_v59  ;;  %v2209_v21 = vpop.f32.mrb[28].mxu1 }
 0x149   : > { %v2210_v17 = vpop.f32.mrb[29].mxu1 }
 0x14a   : > { %v1557_v36 = vadd.f32 %v2168_v48, %v1492_v49  ;;  %v1619_v45 = vadd.f32 %v2205_v18, %v1554_v39  ;;  %v2211_v14 = vadd.f32 %v2210_v17, %v2209_v21  ;;  %v2212_v55 = vpop.f32.mrb[30].mxu1 }
 0x14b   : > { %v2213_v23 = vpop.f32.mrb[31].mxu1 }
 0x14c   : > { %v2169_v28 = vpop.f32.mrb[28].mxu0  ;;  %v1622_v5 = vadd.f32 %v2208_v53, %v1557_v36  ;;  %v2214_v52 = vadd.f32 %v2213_v23, %v2212_v55 }
 0x14d   : > { %v2170_v58 = vpop.f32.mrb[29].mxu0 }
 0x14e   : > { %v2171_v7 = vadd.f32 %v2170_v58, %v2169_v28  ;;  %v2172_v22 = vpop.f32.mrb[30].mxu0 }
 0x14f   : > { %v2173_v33 = vpop.f32.mrb[31].mxu0 }
 0x150   : > { %v1562_v54 = vadd.f32 %v2171_v7, %v3119_v20  ;;  %v2174_v40 = vadd.f32 %v2173_v33, %v2172_v22 }
 0x151   : > { %v2249_v50 = vpop.f32.mrb[32].mxu1 }
 0x152   : > { %v1565_v49 = vadd.f32 %v2174_v40, %v3121_v56  ;;  %v1627_v57 = vadd.f32 %v2211_v14, %v1562_v54  ;;  %v1683_v51 = vpop.f32.mrb[33].mxu1 }
 0x153   : > { %v1684_v60 = vadd.f32 %v1683_v51, %v1619_v45  ;;  %v2250_v0 = vpop.f32.mrb[34].mxu1 }
 0x154   : > { %v2245_v63 = vpop.f32.mrb[32].mxu0  ;;  %v1692_v41 = vadd.f32 %v2249_v50, %v1627_v57  ;;  %v1630_v13 = vadd.f32 %v2214_v52, %v1565_v49  ;;  %v1686_v4 = vpop.f32.mrb[35].mxu1 }
 0x155   : > { %v1676_v15 = vadd.f32 %v2245_v63, %v1611_v16  ;;  %v1667_v6 = vpop.f32.mrb[33].mxu0  ;;  %v1687_v10 = vadd.f32 %v1686_v4, %v1622_v5  ;;  %v1731_v16 = vmul.f32 %v1684_v60, %v1684_v60 }
 0x156   : > { %v1668_v3 = vadd.f32 %v1667_v6, %v1603_v9  ;;  %v2246_v19 = vpop.f32.mrb[34].mxu0  ;;  %v1695_v20 = vadd.f32 %v2250_v0, %v1630_v13  ;;  %v1733_v62 = vmul.f32 %v1692_v41, %v1692_v41 }
 0x157   : > { %v1679_v56 = vadd.f32 %v2246_v19, %v1614_v37  ;;  %v1670_v42 = vpop.f32.mrb[35].mxu0  ;;  %v2042_v24 = vpack.c.bf16 %v1687_v10, %v1684_v60  ;;  %v1729_v2 = vmul.f32 %v1676_v15, %v1676_v15  ;;  %v1732_v34 = vmul.f32 %v1687_v10, %v1687_v10 }
 0x158   : > { %v2047_v47 = vpack.c.bf16 %v1695_v20, %v1692_v41  ;;  %v1671_v11 = vadd.f32 %v1670_v42, %v3123_v27  ;;  %v1727_v25 = vmul.f32 %v1668_v3, %v1668_v3  ;;  %v1734_v12 = vmul.f32 %v1695_v20, %v1695_v20 }
 0x159   : > { %v2037_v61 = vpack.c.bf16 %v1679_v56, %v1676_v15  ;;  %2053 = vst [vmem:[%s328_s14 + $0x10] sm:$0xff] %v2042_v24   ;;  %v1730_v30 = vmul.f32 %v1679_v56, %v1679_v56 }
 0x15a   : > { %2054 = vst [vmem:[%s328_s14 + $0x18] sm:$0xff] %v2047_v47   ;;  %v2032_v26 = vpack.c.bf16 %v1671_v11, %v1668_v3  ;;  %v1714_v1 = vadd.f32 %v1671_v11, %v1668_v3  ;;  %v1728_v9 = vmul.f32 %v1671_v11, %v1671_v11 }
 0x15b   : > { %2052 = vst [vmem:[%s328_s14 + $0x8] sm:$0xff] %v2037_v61  }
 0x15c   : > { %2033 = vst [vmem:[%s328_s14] sm:$0xff] %v2032_v26   ;;  %v1715_v43 = vadd.f32 %v1714_v1, %v1676_v15  ;;  %v1735_v29 = vadd.f32 %v1728_v9, %v1727_v25 }
 0x15e   : > { %v1736_v31 = vadd.f32 %v1735_v29, %v1729_v2  ;;  %v1716_v32 = vadd.f32 %v1715_v43, %v1679_v56 }
 0x160   : > { %v1717_v8 = vadd.f32 %v1716_v32, %v1684_v60  ;;  %v1737_v38 = vadd.f32 %v1736_v31, %v1730_v30 }
 0x162   : > { %v1718_v27 = vadd.f32 %v1717_v8, %v1687_v10  ;;  %v1738_v37 = vadd.f32 %v1737_v38, %v1731_v16 }
 0x164   : > { %v1719_v18 = vadd.f32 %v1718_v27, %v1692_v41  ;;  %v1739_v44 = vadd.f32 %v1738_v37, %v1732_v34 }
 0x166   : > { %v1720_v59 = vadd.f32 %v1719_v18, %v1695_v20  ;;  %v1740_v35 = vadd.f32 %v1739_v44, %v1733_v62 }
 0x168   : > { %v1721_v46 = vrot.slane %v1720_v59, 4  ;;  %v1741_v53 = vadd.f32 %v1740_v35, %v1734_v12 }
 0x16a   : > { %v1722_v39 = vadd.f32 %v1721_v46, %v1720_v59  ;;  %v1742_v48 = vrot.slane %v1741_v53, 4 }
 0x16c   : > { %v1723_v36 = vrot.slane %v1722_v39, 2  ;;  %v1743_v45 = vadd.f32 %v1742_v48, %v1741_v53 }
 0x16e   : > { %v1724_v21 = vadd.f32 %v1723_v36, %v1722_v39  ;;  %v1744_v28 = vrot.slane %v1743_v45, 2 }
 0x170   : > { %v1725_v17 = vrot.slane %v1724_v21, 1  ;;  %v1745_v5 = vadd.f32 %v1744_v28, %v1743_v45 }
 0x172   : > { %v1746_v58 = vrot.slane %v1745_v5, 1  ;;  %v1726_v14 = vadd.f32 %v1725_v17, %v1724_v21 }
 0x174   : > { %v1747_v55 = vadd.f32 %v1746_v58, %v1745_v5 }
 0x176   : > { %v1749_v7 = vsel %vm423_vm0, %v1726_v14, %v1747_v55 }
 0x177   : > { %v1751_v22 = vsel %vm1750_vm7, %v1749_v7, 0.0 }
 0x178   : > { %1752 = vst [vmem:[%s336_s17] sm:$0xff] %v1751_v22 }
 0x179 PF: > { %s16_s22 = sadd.s32 1, %s2478_s22   ;;  %s3166_s18 = smov %s2466_s19 }
 0x17a   : > { %p13_p10 = scmp.ge.s32.totalorder %s16_s22, 4   ;;  %s3167_s19 = smov %s2547_s26 }
 0x17b   : > { %s3168_s20 = smov %s2474_s21  ;;  %s3169_s21 = smov %s3171_s23 }
 0x17c   :  { %15 = sbr.rel (!%p13_p10) target bundleno = 3 (0x3), region = 131 }

</bundles_post_ra>
